<compile_context>
chip_gen: v7x
topology: tpu7x:2x2x1
jax: 0.10.0
libtpu: 0.0.40
codegen_flags: <defaults>
</compile_context>

<pallas_src>
import jax
import jax.numpy as jnp
from jax.experimental import pallas as pl
from jax.experimental.pallas import tpu as pltpu


# ----------------------------------------------------------------------------
# Fused bottleneck kernel: one grid point == one (batch, row-tile) slab.
# ----------------------------------------------------------------------------
def _simple_bottleneck_kernel(xm_ref, xt_ref, xb_ref, w1_ref, bn1_ref,
                              w2_ref, bn2_ref, w3_ref, bn3_ref,
                              o_ref, h1_pad):
    _, rows, W, cin = xm_ref.shape
    width = w1_ref.shape[1]
    cout = w3_ref.shape[1]
    r = pl.program_id(1)
    nrt = pl.num_programs(1)

    # ---- conv1 (1x1) + bn1 + relu over the row tile + its 1-row halo -------
    x_mid = xm_ref[0]                                        # (rows, W, cin) f32
    x_ext = jnp.concatenate([xt_ref[0], x_mid, xb_ref[0]], axis=0)  # (rows+2, W, cin)
    xm = x_ext.astype(jnp.bfloat16).reshape((rows + 2) * W, cin)

    bn1 = bn1_ref[...]                                       # (2, width) f32
    h1 = jnp.dot(xm, w1_ref[...], preferred_element_type=jnp.float32)
    h1 = jnp.maximum(h1 * bn1[0:1, :] + bn1[1:2, :], 0.0)
    h1_pad[...] = h1.astype(jnp.bfloat16).reshape(rows + 2, W, width)

    # conv2's zero padding lives in h1-space: at the image top/bottom the halo
    # rows must be zero, NOT relu(bn1(conv1(0))) (bn1 has a bias).
    @pl.when(r == 0)
    def _():
        h1_pad[0, :, :] = jnp.zeros((W, width), jnp.bfloat16)

    @pl.when(r == nrt - 1)
    def _():
        h1_pad[rows + 1, :, :] = jnp.zeros((W, width), jnp.bfloat16)

    # ---- conv2 (3x3, stride 1, pad 1) + bn2 + relu --------------------------
    # Vertical taps = static row slices of the halo scratch; horizontal taps =
    # one zero-column shift per direction.  Tap order (ky-major, then kx)
    # matches w2 reshaped to (9*width, width) in the wrapper.
    zc = jnp.zeros((rows, 1, width), jnp.bfloat16)
    taps = []
    for ky in range(3):
        v = h1_pad[pl.ds(ky, rows), :, :]                    # (rows, W, width)
        left = jnp.concatenate([zc, v[:, : W - 1, :]], axis=1)   # tap[x] = v[x-1]
        right = jnp.concatenate([v[:, 1:, :], zc], axis=1)       # tap[x] = v[x+1]
        taps += [left, v, right]

    bn2 = bn2_ref[...]
    if width % 128 == 0:
        # K-stacked single MXU matmul: (rows*W, 9*width) @ (9*width, width).
        im2col = jnp.concatenate(taps, axis=-1).reshape(rows * W, 9 * width)
        h2 = jnp.dot(im2col, w2_ref[...], preferred_element_type=jnp.float32)
    else:
        # Fallback for non-lane-aligned widths: per-tap matmuls, accumulator
        # initialized from the first tap (no zero-fill, no extra add).
        h2 = None
        for t, tap in enumerate(taps):
            p = jnp.dot(tap.reshape(rows * W, width),
                        w2_ref[pl.ds(t * width, width), :],
                        preferred_element_type=jnp.float32)
            h2 = p if h2 is None else h2 + p
    h2 = jnp.maximum(h2 * bn2[0:1, :] + bn2[1:2, :], 0.0).astype(jnp.bfloat16)

    # ---- conv3 (1x1) + bn3 + residual + relu --------------------------------
    bn3 = bn3_ref[...]
    h3 = jnp.dot(h2, w3_ref[...], preferred_element_type=jnp.float32)
    h3 = h3 * bn3[0:1, :] + bn3[1:2, :]
    h3 = h3 + x_mid.reshape(rows * W, cin)        # f32 identity (downsample=None)
    h3 = jnp.maximum(h3, 0.0)
    o_ref[...] = h3.reshape(1, rows, W, cout).astype(o_ref.dtype)


# ----------------------------------------------------------------------------
# Row-tile chooser: largest divisor of H under a per-step VMEM budget, while
# keeping >= 2 row tiles when possible (v7x has 2 TensorCores per chip).
# ----------------------------------------------------------------------------
def _pick_rows_tile(H, W, cin, width, cout, budget_bytes=12 * 1024 * 1024):
    def footprint(rt):
        return (2 * rt * W * cin * 4          # x blocks (double-buffered, f32)
                + (rt + 2) * W * width * 2    # h1 halo scratch (bf16)
                + rt * W * 9 * width * 2      # K-stacked im2col operand (bf16)
                + rt * W * width * 4          # conv2 f32 result
                + 2 * rt * W * cout * 4)      # out blocks (double-buffered, f32)

    best = 1
    for rt in range(1, H + 1):
        if H % rt == 0 and footprint(rt) <= budget_bytes:
            best = rt
    if best == H and H > 1:
        for rt in range(H // 2, 0, -1):
            if H % rt == 0:
                best = rt
                break
    return best


# ----------------------------------------------------------------------------
# Wrapper (jit'd): one pallas_call for the whole bottleneck.
# ----------------------------------------------------------------------------
def simple_bottleneck_forward(x, params, *, rows_tile=None):
    B, H, W, cin = x.shape
    w1, w2, w3 = params["w1"], params["w2"], params["w3"]
    width = w1.shape[1]
    cout = w3.shape[1]
    assert cin == cout, "residual add needs inplanes == planes (downsample=None)"
    assert w2.shape == (3, 3, width, width)

    if rows_tile is None:
        # NOTE: budget / vmem_limit_bytes below are conservative (safe on v7x's
        # 64 MiB VMEM); on v5e/v6e both can be raised for larger row tiles.
        rows_tile = _pick_rows_tile(H, W, cin, width, cout)
    assert H % rows_tile == 0, (H, rows_tile)
    nrt = H // rows_tile

    # Weights with a constant block index are DMA'd once; reshape w2 here so
    # the kernel can do a single K-stacked matmul (or lane-aligned row slices).
    w2r = w2.reshape(9 * width, width)

    x_mid_spec = pl.BlockSpec((1, rows_tile, W, cin), lambda b, r: (b, r, 0, 0))
    x_top_spec = pl.BlockSpec(
        (1, 1, W, cin),
        lambda b, r: (b, jnp.maximum(r * rows_tile - 1, 0), 0, 0))
    x_bot_spec = pl.BlockSpec(
        (1, 1, W, cin),
        lambda b, r: (b, jnp.minimum((r + 1) * rows_tile, H - 1), 0, 0))

    return pl.pallas_call(
        _simple_bottleneck_kernel,
        out_shape=jax.ShapeDtypeStruct((B, H, W, cout), jnp.float32),
        grid_spec=pltpu.PrefetchScalarGridSpec(
            num_scalar_prefetch=0,
            grid=(B, nrt),
            in_specs=[
                x_mid_spec,
                x_top_spec,
                x_bot_spec,
                pl.BlockSpec((cin, width), lambda b, r: (0, 0)),
                pl.BlockSpec((2, width), lambda b, r: (0, 0)),
                pl.BlockSpec((9 * width, width), lambda b, r: (0, 0)),
                pl.BlockSpec((2, width), lambda b, r: (0, 0)),
                pl.BlockSpec((width, cout), lambda b, r: (0, 0)),
                pl.BlockSpec((2, cout), lambda b, r: (0, 0)),
            ],
            out_specs=pl.BlockSpec((1, rows_tile, W, cout),
                                   lambda b, r: (b, r, 0, 0)),
            scratch_shapes=[
                pltpu.VMEM((rows_tile + 2, W, width), jnp.bfloat16),
            ]),
        compiler_params=pltpu.CompilerParams(
            dimension_semantics=("parallel", "parallel"),
            vmem_limit_bytes=32 * 1024 * 1024),
    )(x, x, x, w1, params["bn1"], w2r, params["bn2"], w3, params["bn3"])


# ----------------------------------------------------------------------------
# Parameters (deterministic, in-script).  BN is eval-mode: folded to affine.
# ----------------------------------------------------------------------------
def make_params(key, inplanes, planes, groups=1, base_width=64):
    width = int(planes * (base_width / 64.0)) * groups
    k1, k2, k3, kb = jax.random.split(key, 4)

    def conv_w(k, kh, kw, ci, co):
        fan_in = kh * kw * ci
        w = jax.random.normal(k, (kh, kw, ci, co), jnp.float32) * (2.0 / fan_in) ** 0.5
        return w.astype(jnp.bfloat16)

    def bn_affine(k, c, eps=1e-5):
        kg, kb_, km, kv = jax.random.split(k, 4)
        gamma = 1.0 + 0.1 * jax.random.normal(kg, (c,), jnp.float32)
        beta = 0.1 * jax.random.normal(kb_, (c,), jnp.float32)
        mean = 0.1 * jax.random.normal(km, (c,), jnp.float32)
        var = jnp.abs(1.0 + 0.1 * jax.random.normal(kv, (c,), jnp.float32))
        scale = gamma / jnp.sqrt(var + eps)
        bias = beta - mean * scale
        return jnp.stack([scale, bias], axis=0)     # (2, c) f32

    kb1, kb2, kb3 = jax.random.split(kb, 3)
    return {
        "w1": conv_w(k1, 1, 1, inplanes, width)[0, 0],   # (cin, width)      bf16
        "bn1": bn_affine(kb1, width),
        "w2": conv_w(k2, 3, 3, width, width),            # (3,3,width,width) bf16
        "bn2": bn_affine(kb2, width),
        "w3": conv_w(k3, 1, 1, width, planes)[0, 0],     # (width, planes)   bf16
        "bn3": bn_affine(kb3, planes),
    }


# ----------------------------------------------------------------------------
# Pure-JAX reference (lax.conv) mirroring the module forward: conv inputs are
# bf16-rounded (as in the kernel), epilogue and identity are f32.
# ----------------------------------------------------------------------------
def ref_simple_bottleneck(x, params):
    f32 = jnp.float32

    def conv(inp, w, padding):
        return jax.lax.conv_general_dilated(
            inp.astype(jnp.bfloat16).astype(f32), w.astype(f32), (1, 1),
            [(padding, padding), (padding, padding)],
            dimension_numbers=("NHWC", "HWIO", "NHWC"),
            precision=jax.lax.Precision.HIGHEST)

    def bn(y, a):
        return y * a[0] + a[1]

    out = jnp.maximum(bn(conv(x, params["w1"][None, None], 0), params["bn1"]), 0.0)
    out = jnp.maximum(bn(conv(out, params["w2"], 1), params["bn2"]), 0.0)
    out = bn(conv(out, params["w3"][None, None], 0), params["bn3"]) + x
    return jnp.maximum(out, 0.0)


# ----------------------------------------------------------------------------
if __name__ == "__main__":
    key = jax.random.PRNGKey(0)
    kx, kp = jax.random.split(key)

    inplanes = planes = 128     # width == 128 (base_width=64, groups=1): lane-aligned
    B, H, W = 2, 16, 16
    x = jax.random.normal(kx, (B, H, W, inplanes), jnp.float32)   # NHWC

    params = make_params(kp, inplanes, planes)

    fwd = jax.jit(simple_bottleneck_forward)
    out = jax.block_until_ready(fwd(x, params))   # grid (B=2, row tiles=2)

    ref = ref_simple_bottleneck(x, params)
    assert out.shape == ref.shape, (out.shape, ref.shape)
    err = float(jnp.max(jnp.abs(out - ref)))
    tol = 2e-3 * (float(jnp.max(jnp.abs(ref))) + 1.0)
    assert err <= tol, f"mismatch: max err {err} > tol {tol}"

    print("KERNEL_OK")
</pallas_src>

<mosaic_0001>
module attributes {stable_mosaic.version = 11 : i64} {
  func.func @_simple_bottleneck_kernel(%arg0: i32, %arg1: i32, %arg2: memref<1x8x16x128xf32, #tpu.memory_space<vmem>>, %arg3: memref<1x1x16x128xf32, #tpu.memory_space<vmem>>, %arg4: memref<1x1x16x128xf32, #tpu.memory_space<vmem>>, %arg5: memref<128x128xbf16, #tpu.memory_space<vmem>>, %arg6: memref<2x128xf32, #tpu.memory_space<vmem>>, %arg7: memref<1152x128xbf16, #tpu.memory_space<vmem>>, %arg8: memref<2x128xf32, #tpu.memory_space<vmem>>, %arg9: memref<128x128xbf16, #tpu.memory_space<vmem>>, %arg10: memref<2x128xf32, #tpu.memory_space<vmem>>, %arg11: memref<1x8x16x128xf32, #tpu.memory_space<vmem>>, %arg12: memref<10x16x128xbf16, #tpu.memory_space<vmem>>) attributes {dimension_semantics = [#tpu.dimension_semantics<parallel>, #tpu.dimension_semantics<parallel>], iteration_bounds = array<i64: 2, 2>, scalar_prefetch = 0 : i64, scratch_operands = 1 : i64, tpu.core_type = #tpu.core_type<tc>, window_params = [{transform_indices = @transform_0, window_bounds = array<i64: 1, 8, 16, 128>}, {transform_indices = @transform_1, window_bounds = array<i64: 1, 1, 16, 128>}, {transform_indices = @transform_2, window_bounds = array<i64: 1, 1, 16, 128>}, {pipeline_mode = #tpu.pipeline_mode<synchronous>, transform_indices = @transform_3, window_bounds = array<i64: 128, 128>}, {pipeline_mode = #tpu.pipeline_mode<synchronous>, transform_indices = @transform_4, window_bounds = array<i64: 2, 128>}, {pipeline_mode = #tpu.pipeline_mode<synchronous>, transform_indices = @transform_5, window_bounds = array<i64: 1152, 128>}, {pipeline_mode = #tpu.pipeline_mode<synchronous>, transform_indices = @transform_6, window_bounds = array<i64: 2, 128>}, {pipeline_mode = #tpu.pipeline_mode<synchronous>, transform_indices = @transform_7, window_bounds = array<i64: 128, 128>}, {pipeline_mode = #tpu.pipeline_mode<synchronous>, transform_indices = @transform_8, window_bounds = array<i64: 2, 128>}, {transform_indices = @transform_9, window_bounds = array<i64: 1, 8, 16, 128>}]} {
    %c0 = arith.constant 0 : index
    %c0_0 = arith.constant 0 : index
    %c0_1 = arith.constant 0 : index
    %c0_2 = arith.constant 0 : index
    %0 = vector.load %arg2[%c0, %c0_0, %c0_1, %c0_2] : memref<1x8x16x128xf32, #tpu.memory_space<vmem>>, vector<1x8x16x128xf32>
    %1 = vector.shape_cast %0 : vector<1x8x16x128xf32> to vector<8x16x128xf32>
    %c0_3 = arith.constant 0 : index
    %c0_4 = arith.constant 0 : index
    %c0_5 = arith.constant 0 : index
    %c0_6 = arith.constant 0 : index
    %2 = vector.load %arg3[%c0_3, %c0_4, %c0_5, %c0_6] : memref<1x1x16x128xf32, #tpu.memory_space<vmem>>, vector<1x1x16x128xf32>
    %3 = vector.shape_cast %2 : vector<1x1x16x128xf32> to vector<1x16x128xf32>
    %c0_7 = arith.constant 0 : index
    %c0_8 = arith.constant 0 : index
    %c0_9 = arith.constant 0 : index
    %c0_10 = arith.constant 0 : index
    %4 = vector.load %arg4[%c0_7, %c0_8, %c0_9, %c0_10] : memref<1x1x16x128xf32, #tpu.memory_space<vmem>>, vector<1x1x16x128xf32>
    %5 = vector.shape_cast %4 : vector<1x1x16x128xf32> to vector<1x16x128xf32>
    %6 = tpu.concatenate %3, %1, %5 in 0 : vector<1x16x128xf32>, vector<8x16x128xf32>, vector<1x16x128xf32> -> vector<10x16x128xf32>
    %7 = arith.truncf %6 : vector<10x16x128xf32> to vector<10x16x128xbf16>
    %8 = vector.shape_cast %7 : vector<10x16x128xbf16> to vector<160x128xbf16>
    %c0_11 = arith.constant 0 : index
    %c0_12 = arith.constant 0 : index
    %9 = vector.load %arg6[%c0_11, %c0_12] : memref<2x128xf32, #tpu.memory_space<vmem>>, vector<2x128xf32>
    %c0_13 = arith.constant 0 : index
    %c0_14 = arith.constant 0 : index
    %10 = vector.load %arg5[%c0_13, %c0_14] : memref<128x128xbf16, #tpu.memory_space<vmem>>, vector<128x128xbf16>
    %cst = arith.constant dense<0.000000e+00> : vector<160x128xf32>
    %11 = tpu.matmul %8, %10, %cst {dimension_numbers = #tpu.dot_dimension_numbers<[1], [0], [0], [1], [0, 0, 1, 1], [], []>} : vector<160x128xbf16>, vector<128x128xbf16>, vector<160x128xf32> -> vector<160x128xf32>
    %12 = vector.extract_strided_slice %9 {offsets = [0, 0], sizes = [1, 128], strides = [1, 1]} : vector<2x128xf32> to vector<1x128xf32>
    %13 = vector.broadcast %12 : vector<1x128xf32> to vector<160x128xf32>
    %14 = arith.mulf %11, %13 : vector<160x128xf32>
    %15 = vector.extract_strided_slice %9 {offsets = [1, 0], sizes = [1, 128], strides = [1, 1]} : vector<2x128xf32> to vector<1x128xf32>
    %16 = vector.broadcast %15 : vector<1x128xf32> to vector<160x128xf32>
    %17 = arith.addf %14, %16 : vector<160x128xf32>
    %cst_15 = arith.constant 0.000000e+00 : f32
    %18 = vector.broadcast %cst_15 : f32 to vector<160x128xf32>
    %19 = arith.maximumf %17, %18 : vector<160x128xf32>
    %20 = arith.truncf %19 : vector<160x128xf32> to vector<160x128xbf16>
    %21 = vector.shape_cast %20 : vector<160x128xbf16> to vector<10x16x128xbf16>
    %c0_16 = arith.constant 0 : index
    %c0_17 = arith.constant 0 : index
    %c0_18 = arith.constant 0 : index
    %22 = vector.load %arg12[%c0_16, %c0_17, %c0_18] : memref<10x16x128xbf16, #tpu.memory_space<vmem>>, vector<10x16x128xbf16>
    tpu.vector_store %arg12[%c0_16, %c0_17, %c0_18], %21 {strides = array<i32>} : memref<10x16x128xbf16, #tpu.memory_space<vmem>>, vector<10x16x128xbf16>,
    %c0_i32 = arith.constant 0 : i32
    %23 = arith.cmpi eq, %arg1, %c0_i32 : i32
    %24 = arith.extui %23 : i1 to i32
    %c0_i32_19 = arith.constant 0 : i32
    %25 = arith.cmpi ne, %24, %c0_i32_19 : i32
    scf.if %25 {
      %cst_45 = arith.constant 0.000000e+00 : bf16
      %74 = vector.broadcast %cst_45 : bf16 to vector<16x128xbf16>
      %c0_46 = arith.constant 0 : index
      %c0_47 = arith.constant 0 : index
      %c0_48 = arith.constant 0 : index
      %75 = vector.load %arg12[%c0_46, %c0_47, %c0_48] : memref<10x16x128xbf16, #tpu.memory_space<vmem>>, vector<1x16x128xbf16>
      %76 = vector.shape_cast %75 : vector<1x16x128xbf16> to vector<16x128xbf16>
      %77 = vector.shape_cast %74 : vector<16x128xbf16> to vector<1x16x128xbf16>
      tpu.vector_store %arg12[%c0_46, %c0_47, %c0_48], %77 {strides = array<i32>} : memref<10x16x128xbf16, #tpu.memory_space<vmem>>, vector<1x16x128xbf16>,
    } else {
    }
    %c1_i32 = arith.constant 1 : i32
    %26 = arith.cmpi eq, %arg1, %c1_i32 : i32
    %27 = arith.extui %26 : i1 to i32
    %c0_i32_20 = arith.constant 0 : i32
    %28 = arith.cmpi ne, %27, %c0_i32_20 : i32
    scf.if %28 {
      %cst_45 = arith.constant 0.000000e+00 : bf16
      %74 = vector.broadcast %cst_45 : bf16 to vector<16x128xbf16>
      %c9 = arith.constant 9 : index
      %c0_46 = arith.constant 0 : index
      %c0_47 = arith.constant 0 : index
      %75 = vector.load %arg12[%c9, %c0_46, %c0_47] : memref<10x16x128xbf16, #tpu.memory_space<vmem>>, vector<1x16x128xbf16>
      %76 = vector.shape_cast %75 : vector<1x16x128xbf16> to vector<16x128xbf16>
      %77 = vector.shape_cast %74 : vector<16x128xbf16> to vector<1x16x128xbf16>
      tpu.vector_store %arg12[%c9, %c0_46, %c0_47], %77 {strides = array<i32>} : memref<10x16x128xbf16, #tpu.memory_space<vmem>>, vector<1x16x128xbf16>,
    } else {
    }
    %cst_21 = arith.constant 0.000000e+00 : bf16
    %29 = vector.broadcast %cst_21 : bf16 to vector<8x1x128xbf16>
    %c0_22 = arith.constant 0 : index
    %c0_23 = arith.constant 0 : index
    %c0_24 = arith.constant 0 : index
    %30 = vector.load %arg12[%c0_22, %c0_23, %c0_24] : memref<10x16x128xbf16, #tpu.memory_space<vmem>>, vector<8x16x128xbf16>
    %31 = vector.extract_strided_slice %30 {offsets = [0, 0, 0], sizes = [8, 15, 128], strides = [1, 1, 1]} : vector<8x16x128xbf16> to vector<8x15x128xbf16>
    %32 = tpu.concatenate %29, %31 in 1 : vector<8x1x128xbf16>, vector<8x15x128xbf16> -> vector<8x16x128xbf16>
    %33 = vector.extract_strided_slice %30 {offsets = [0, 1, 0], sizes = [8, 15, 128], strides = [1, 1, 1]} : vector<8x16x128xbf16> to vector<8x15x128xbf16>
    %34 = tpu.concatenate %33, %29 in 1 : vector<8x15x128xbf16>, vector<8x1x128xbf16> -> vector<8x16x128xbf16>
    %c1 = arith.constant 1 : index
    %c0_25 = arith.constant 0 : index
    %c0_26 = arith.constant 0 : index
    %35 = vector.load %arg12[%c1, %c0_25, %c0_26] : memref<10x16x128xbf16, #tpu.memory_space<vmem>>, vector<8x16x128xbf16>
    %36 = vector.extract_strided_slice %35 {offsets = [0, 0, 0], sizes = [8, 15, 128], strides = [1, 1, 1]} : vector<8x16x128xbf16> to vector<8x15x128xbf16>
    %37 = tpu.concatenate %29, %36 in 1 : vector<8x1x128xbf16>, vector<8x15x128xbf16> -> vector<8x16x128xbf16>
    %38 = vector.extract_strided_slice %35 {offsets = [0, 1, 0], sizes = [8, 15, 128], strides = [1, 1, 1]} : vector<8x16x128xbf16> to vector<8x15x128xbf16>
    %39 = tpu.concatenate %38, %29 in 1 : vector<8x15x128xbf16>, vector<8x1x128xbf16> -> vector<8x16x128xbf16>
    %c2 = arith.constant 2 : index
    %c0_27 = arith.constant 0 : index
    %c0_28 = arith.constant 0 : index
    %40 = vector.load %arg12[%c2, %c0_27, %c0_28] : memref<10x16x128xbf16, #tpu.memory_space<vmem>>, vector<8x16x128xbf16>
    %41 = vector.extract_strided_slice %40 {offsets = [0, 0, 0], sizes = [8, 15, 128], strides = [1, 1, 1]} : vector<8x16x128xbf16> to vector<8x15x128xbf16>
    %42 = tpu.concatenate %29, %41 in 1 : vector<8x1x128xbf16>, vector<8x15x128xbf16> -> vector<8x16x128xbf16>
    %43 = vector.extract_strided_slice %40 {offsets = [0, 1, 0], sizes = [8, 15, 128], strides = [1, 1, 1]} : vector<8x16x128xbf16> to vector<8x15x128xbf16>
    %44 = tpu.concatenate %43, %29 in 1 : vector<8x15x128xbf16>, vector<8x1x128xbf16> -> vector<8x16x128xbf16>
    %c0_29 = arith.constant 0 : index
    %c0_30 = arith.constant 0 : index
    %45 = vector.load %arg8[%c0_29, %c0_30] : memref<2x128xf32, #tpu.memory_space<vmem>>, vector<2x128xf32>
    %46 = tpu.concatenate %32, %30, %34, %37, %35, %39, %42, %40, %44 in 2 : vector<8x16x128xbf16>, vector<8x16x128xbf16>, vector<8x16x128xbf16>, vector<8x16x128xbf16>, vector<8x16x128xbf16>, vector<8x16x128xbf16>, vector<8x16x128xbf16>, vector<8x16x128xbf16>, vector<8x16x128xbf16> -> vector<8x16x1152xbf16>
    %47 = vector.shape_cast %46 : vector<8x16x1152xbf16> to vector<128x1152xbf16>
    %c0_31 = arith.constant 0 : index
    %c0_32 = arith.constant 0 : index
    %48 = vector.load %arg7[%c0_31, %c0_32] : memref<1152x128xbf16, #tpu.memory_space<vmem>>, vector<1152x128xbf16>
    %cst_33 = arith.constant dense<0.000000e+00> : vector<128x128xf32>
    %49 = tpu.matmul %47, %48, %cst_33 {dimension_numbers = #tpu.dot_dimension_numbers<[1], [0], [0], [1], [0, 0, 1, 1], [], []>} : vector<128x1152xbf16>, vector<1152x128xbf16>, vector<128x128xf32> -> vector<128x128xf32>
    %50 = vector.extract_strided_slice %45 {offsets = [0, 0], sizes = [1, 128], strides = [1, 1]} : vector<2x128xf32> to vector<1x128xf32>
    %51 = vector.broadcast %50 : vector<1x128xf32> to vector<128x128xf32>
    %52 = arith.mulf %49, %51 : vector<128x128xf32>
    %53 = vector.extract_strided_slice %45 {offsets = [1, 0], sizes = [1, 128], strides = [1, 1]} : vector<2x128xf32> to vector<1x128xf32>
    %54 = vector.broadcast %53 : vector<1x128xf32> to vector<128x128xf32>
    %55 = arith.addf %52, %54 : vector<128x128xf32>
    %cst_34 = arith.constant 0.000000e+00 : f32
    %56 = vector.broadcast %cst_34 : f32 to vector<128x128xf32>
    %57 = arith.maximumf %55, %56 : vector<128x128xf32>
    %58 = arith.truncf %57 : vector<128x128xf32> to vector<128x128xbf16>
    %c0_35 = arith.constant 0 : index
    %c0_36 = arith.constant 0 : index
    %59 = vector.load %arg10[%c0_35, %c0_36] : memref<2x128xf32, #tpu.memory_space<vmem>>, vector<2x128xf32>
    %c0_37 = arith.constant 0 : index
    %c0_38 = arith.constant 0 : index
    %60 = vector.load %arg9[%c0_37, %c0_38] : memref<128x128xbf16, #tpu.memory_space<vmem>>, vector<128x128xbf16>
    %cst_39 = arith.constant dense<0.000000e+00> : vector<128x128xf32>
    %61 = tpu.matmul %58, %60, %cst_39 {dimension_numbers = #tpu.dot_dimension_numbers<[1], [0], [0], [1], [0, 0, 1, 1], [], []>} : vector<128x128xbf16>, vector<128x128xbf16>, vector<128x128xf32> -> vector<128x128xf32>
    %62 = vector.extract_strided_slice %59 {offsets = [0, 0], sizes = [1, 128], strides = [1, 1]} : vector<2x128xf32> to vector<1x128xf32>
    %63 = vector.broadcast %62 : vector<1x128xf32> to vector<128x128xf32>
    %64 = arith.mulf %61, %63 : vector<128x128xf32>
    %65 = vector.extract_strided_slice %59 {offsets = [1, 0], sizes = [1, 128], strides = [1, 1]} : vector<2x128xf32> to vector<1x128xf32>
    %66 = vector.broadcast %65 : vector<1x128xf32> to vector<128x128xf32>
    %67 = arith.addf %64, %66 : vector<128x128xf32>
    %68 = vector.shape_cast %1 : vector<8x16x128xf32> to vector<128x128xf32>
    %69 = arith.addf %67, %68 : vector<128x128xf32>
    %cst_40 = arith.constant 0.000000e+00 : f32
    %70 = vector.broadcast %cst_40 : f32 to vector<128x128xf32>
    %71 = arith.maximumf %69, %70 : vector<128x128xf32>
    %72 = vector.shape_cast %71 : vector<128x128xf32> to vector<1x8x16x128xf32>
    %c0_41 = arith.constant 0 : index
    %c0_42 = arith.constant 0 : index
    %c0_43 = arith.constant 0 : index
    %c0_44 = arith.constant 0 : index
    %73 = vector.load %arg11[%c0_41, %c0_42, %c0_43, %c0_44] : memref<1x8x16x128xf32, #tpu.memory_space<vmem>>, vector<1x8x16x128xf32>
    tpu.vector_store %arg11[%c0_41, %c0_42, %c0_43, %c0_44], %72 {strides = array<i32>} : memref<1x8x16x128xf32, #tpu.memory_space<vmem>>, vector<1x8x16x128xf32>,
    return
  }
  func.func @transform_0(%arg0: i32, %arg1: i32) -> (i32, i32, i32, i32) {
    %c0_i32 = arith.constant 0 : i32
    %c0_i32_0 = arith.constant 0 : i32
    %c0_i32_1 = arith.constant 0 : i32
    return %arg0, %arg1, %c0_i32, %c0_i32_0 : i32, i32, i32, i32
  }
  func.func @transform_1(%arg0: i32, %arg1: i32) -> (i32, i32, i32, i32) {
    %c8_i32 = arith.constant 8 : i32
    %0 = arith.muli %arg1, %c8_i32 : i32
    %c1_i32 = arith.constant 1 : i32
    %1 = arith.subi %0, %c1_i32 : i32
    %c0_i32 = arith.constant 0 : i32
    %2 = arith.maxsi %1, %c0_i32 : i32
    %c0_i32_0 = arith.constant 0 : i32
    %c0_i32_1 = arith.constant 0 : i32
    %c0_i32_2 = arith.constant 0 : i32
    return %arg0, %2, %c0_i32_0, %c0_i32_1 : i32, i32, i32, i32
  }
  func.func @transform_2(%arg0: i32, %arg1: i32) -> (i32, i32, i32, i32) {
    %c1_i32 = arith.constant 1 : i32
    %0 = arith.addi %arg1, %c1_i32 : i32
    %c8_i32 = arith.constant 8 : i32
    %1 = arith.muli %0, %c8_i32 : i32
    %c15_i32 = arith.constant 15 : i32
    %2 = arith.minsi %1, %c15_i32 : i32
    %c0_i32 = arith.constant 0 : i32
    %c0_i32_0 = arith.constant 0 : i32
    %c0_i32_1 = arith.constant 0 : i32
    return %arg0, %2, %c0_i32, %c0_i32_0 : i32, i32, i32, i32
  }
  func.func @transform_3(%arg0: i32, %arg1: i32) -> (i32, i32) {
    %c0_i32 = arith.constant 0 : i32
    %c0_i32_0 = arith.constant 0 : i32
    %c0_i32_1 = arith.constant 0 : i32
    return %c0_i32, %c0_i32_0 : i32, i32
  }
  func.func @transform_4(%arg0: i32, %arg1: i32) -> (i32, i32) {
    %c0_i32 = arith.constant 0 : i32
    %c0_i32_0 = arith.constant 0 : i32
    %c0_i32_1 = arith.constant 0 : i32
    return %c0_i32, %c0_i32_0 : i32, i32
  }
  func.func @transform_5(%arg0: i32, %arg1: i32) -> (i32, i32) {
    %c0_i32 = arith.constant 0 : i32
    %c0_i32_0 = arith.constant 0 : i32
    %c0_i32_1 = arith.constant 0 : i32
    return %c0_i32, %c0_i32_0 : i32, i32
  }
  func.func @transform_6(%arg0: i32, %arg1: i32) -> (i32, i32) {
    %c0_i32 = arith.constant 0 : i32
    %c0_i32_0 = arith.constant 0 : i32
    %c0_i32_1 = arith.constant 0 : i32
    return %c0_i32, %c0_i32_0 : i32, i32
  }
  func.func @transform_7(%arg0: i32, %arg1: i32) -> (i32, i32) {
    %c0_i32 = arith.constant 0 : i32
    %c0_i32_0 = arith.constant 0 : i32
    %c0_i32_1 = arith.constant 0 : i32
    return %c0_i32, %c0_i32_0 : i32, i32
  }
  func.func @transform_8(%arg0: i32, %arg1: i32) -> (i32, i32) {
    %c0_i32 = arith.constant 0 : i32
    %c0_i32_0 = arith.constant 0 : i32
    %c0_i32_1 = arith.constant 0 : i32
    return %c0_i32, %c0_i32_0 : i32, i32
  }
  func.func @transform_9(%arg0: i32, %arg1: i32) -> (i32, i32, i32, i32) {
    %c0_i32 = arith.constant 0 : i32
    %c0_i32_0 = arith.constant 0 : i32
    %c0_i32_1 = arith.constant 0 : i32
    return %arg0, %arg1, %c0_i32, %c0_i32_0 : i32, i32, i32, i32
  }
}

</mosaic_0001>

<bundles_post_ra>
// kernel: simple_bottleneck_forward.1
= control target key start
LH: loop header
LB: loop body
LE: loop exit
PB: predicated region body
PF: predicated region fallthrough
CT: control target
= control target key end

     0   :  { %s5024_s0 = inlined_call_operand.hbm [shape: f32[2,16,16,128], index: 0, kind: input, shape index: {}, may-alias: {0,1,2}]   ;;  %s5025_s1 = inlined_call_operand.hbm [shape: f32[2,16,16,128], index: 1, kind: input, shape index: {}, may-alias: {0,1,2}]   ;;  %s5026_s2 = inlined_call_operand.hbm [shape: f32[2,16,16,128], index: 2, kind: input, shape index: {}, may-alias: {0,1,2}]   ;;  %s5027_s3 = inlined_call_operand.hbm [shape: bf16[128,128], index: 3, kind: input, shape index: {}]   ;;  %s5028_s4 = inlined_call_operand.vmem [shape: f32[2,128], index: 4, kind: input, shape index: {}]   ;;  %s5029_s5 = inlined_call_operand.hbm [shape: bf16[1152,128], index: 5, kind: input, shape index: {}]   ;;  %s5030_s6 = inlined_call_operand.vmem [shape: f32[2,128], index: 6, kind: input, shape index: {}]   ;;  %s5031_s7 = inlined_call_operand.hbm [shape: bf16[128,128], index: 7, kind: input, shape index: {}]   ;;  %s5032_s8 = inlined_call_operand.vmem [shape: f32[2,128], index: 8, kind: input, shape index: {}]   ;;  %s5033_s9 = inlined_call_operand.hbm [shape: f32[2,16,16,128], index: 9, kind: output, shape index: {}]  }
   0x1   :  { %5069 = sst [smem:[#allocation37_spill]] %s5024_s0 }
   0x2   :  { %5070 = sst [smem:[#allocation38_spill]] %s5025_s1 }
   0x3   :  { %5071 = sst [smem:[#allocation39_spill]] %s5026_s2 }
   0x4   :  { %5072 = sst [smem:[#allocation40_spill]] %s5027_s3 }
   0x5   :  { %5073 = sst [smem:[#allocation41_spill]] %s5028_s4 }
   0x6   :  { %5074 = sst [smem:[#allocation42_spill]] %s5029_s5 }
   0x7   :  { %5075 = sst [smem:[#allocation43_spill]] %s5030_s6 }
   0x8   :  { %5076 = sst [smem:[#allocation44_spill]] %s5031_s7 }
   0x9   :  { %5077 = sst [smem:[#allocation45_spill]] %s5032_s8 }
   0xa   :  { %5078 = sst [smem:[#allocation46_spill]] %s5033_s9 }
   0xb   :  { %14 = vsyncpa [#allocation4], 0 }
   0xc   :  { %16 = vsyncpa [#allocation4 + $0x1], 0 }
   0xd   :  { %17 = vsyncpa [#allocation7], 0 }
   0xe   :  { %19 = vsyncpa [#allocation7 + $0x1], 0 }
   0xf   :  { %20 = vsyncpa [#allocation10], 0 }
  0x10   :  { %21 = vsyncpa [#allocation13], 0 }
  0x11   :  { %22 = vsyncpa [#allocation5], 0 }
  0x12   :  { %24 = vsyncpa [#allocation5 + $0x1], 0  ;;  %s3976_s30 = smov 0   ;;  %s3978_s10 = smov 0  }
  0x13   :  { %s3980_s11 = smov 0   ;;  %s3982_s12 = smov 0  }
  0x14   :  { %s3984_s13 = smov 0   ;;  %s3986_s14 = smov 0  }
  0x15   :  { %s3988_s15 = smov 0   ;;  %s3990_s16 = smov 0  }
  0x16   :  { %s3992_s17 = smov 0   ;;  %s3994_s18 = smov 0  }
  0x17   :  { %s3996_s19 = smov 0   ;;  %s3998_s20 = smov 0  }
  0x18   :  { %s4000_s21 = smov 0   ;;  %s4002_s22 = smov 0  }
  0x19 LB: > { %5079 = sst [smem:[#allocation21_spill]] %s3857_s30  ;;  %s4047_s23 = sadd.s32 4294967295, %s3909_s22   ;;  %s3909_s22 = sphi %s4002_s22, %s30_s22   ;;  %s3905_s21 = sphi %s4000_s21, %s5170_s21   ;;  %s3901_s20 = sphi %s3998_s20, %s5169_s20   ;;  %s3897_s19 = sphi %s3996_s19, %s5168_s19   ;;  %s3893_s18 = sphi %s3994_s18, %s5167_s18   ;;  %s3889_s17 = sphi %s3992_s17, %s5176_s17   ;;  %s3885_s16 = sphi %s3990_s16, %s5175_s16   ;;  %s3881_s15 = sphi %s3988_s15, %s5174_s15   ;;  %s3877_s14 = sphi %s3986_s14, %s5173_s14   ;;  %s3873_s13 = sphi %s3984_s13, %s5172_s13   ;;  %s3869_s12 = sphi %s3982_s12, %s5171_s12   ;;  %s3865_s11 = sphi %s3980_s11, %s5192_s11   ;;  %s3861_s10 = sphi %s3978_s10, %s5163_s10   ;;  %s3857_s30 = sphi %s3976_s30, %s5162_s30  }
  0x1a   : > { %5080 = sst [smem:[#allocation22_spill]] %s3861_s10  ;;  %p2754_p0 = scmp.ge.s32.totalorder %s3909_s22, 1 }
  0x1b   : > { %5081 = sst [smem:[#allocation23_spill]] %s3865_s11  ;;  %p5035_p1 = scmp.eq.s32.totalorder %s4047_s23, 0 }
  0x1c   : > { %5082 = sst [smem:[#allocation24_spill]] %s3873_s13  ;;  %p301_p3 = scmp.lt.s32.totalorder %s3909_s22, 5 }
  0x1d   : > { %5083 = sst [smem:[#allocation25_spill]] %s3893_s18  ;;  %s3911_s25 = smov [#allocation9]  }
  0x1e   : > { %5084 = sst [smem:[#allocation26_spill]] %s3897_s19  ;;  %p4053_p4 = pnand %p2754_p0, %p301_p3 }
  0x1f   : > { %5085 = sst [smem:[#allocation27_spill]] %s3901_s20  ;;  %s313_s26 = sshll.u32 %s3911_s25, 4  ;;  %s314_s26 = int_to_ptr.vmem [resolvable:$true] %s313_s26 }
  0x20   : > { %5086 = sst [smem:[#allocation28_spill]] %s3905_s21  ;;  %p3330_p5 = pneg %p4053_p4 }
  0x21   : > { %s5087_s24 = scalar_select %p4053_p4, 1, 0 }
  0x22   : > { %p4061_p6 = pnand %p3330_p5, %p5035_p1  ;;  %s5090_s3 = sld [smem:[#allocation40_spill]] }
  0x23   : > { %5088 = sst [smem:[#allocation29_spill]] %s5087_s24 }
  0x24   : > { %s5089_s27 = scalar_select %p4061_p6, 1, 0 }
  0x25   : > { %p4073_p8 = pneg %p4061_p6 }
  0x28   : > { %s3573_s9 = scalar_lea.hbm %s5090_s3, 1024 }
  0x29   : > { %p3574_p7 = scmp.ne.s32.totalorder %s5090_s3, %s3573_s9  ;;  %p3580_p11 = scmp.lt.u32.totalorder %s3573_s9, %s5090_s3 }
  0x2b   : > { %p3576_p9 = pnand %p4073_p8, %p3574_p7 }
  0x2d   : > { %p3577_p10 = pneg %p3576_p9 }
  0x2f   : > { %p3582_p12 = pnand %p3580_p11, %p3577_p10 }
  0x31   : > { %3585 = shalt.err (!%p3582_p12)
}
  0x32   : > { %s3586_s28 = scalar_lea.vmem %s314_s26, 1024  ;;  %p3594_p5 = scmp.lt.s32.totalorder %s314_s26, %s314_s26 }
  0x33   : > { %p3587_p13 = scmp.ne.s32.totalorder %s314_s26, %s3586_s28  ;;  %p3595_p2 = scmp.lt.s32.totalorder %s3586_s28, %s3586_s28 }
  0x35   : > { %p3589_p0 = pnand %p3587_p13, %p4073_p8  ;;  %p3596_p1 = por %p3595_p2, %p3594_p5 }
  0x37   : > { %p3590_p3 = pneg %p3589_p0 }
  0x39   : > { %p3597_p4 = pnand %p3596_p1, %p3590_p3 }
  0x3b   : > { %3600 = shalt.err (!%p3597_p4)
}
  0x3c   : > { %s5039_s8 = smov 64   ;;  %s5041_s6 = smov 4  }
  0x3d   : > { %3333 = dma.hbm_to_vmem [thread:$0]  (!%p4061_p6), %s5090_s3, 1024, %s314_s26, [#allocation10], %s5039_s8, %s5039_s8, %s5041_s6  }
  0x3e   : > { %s39_s19 = sadd.s32 1, %s3901_s20  ;;  %s42_s29 = sadd.s32 1, %s3905_s21 }
  0x3f   : > { %p40_p1 = scmp.ge.s32.totalorder %s39_s19, 2  ;;  %p5055_p2 = scmp.eq.s32.totalorder %s3909_s22, 0 }
  0x40   : > { %s2748_s28 = sshll.u32 %s3901_s20, 3  ;;  %s87_s4 = sadd.s32 1, %s3877_s14 }
  0x41   : > { %s5178_s19 = smov (%p40_p1, %s39_s19), 0  ;;  %s5180_s29 = smov (!%p40_p1, %s42_s29), %s3905_s21 }
  0x42   : > { %5092 = sst [smem:[#allocation30_spill]] %s5178_s19  ;;  %s47_s24 = ssub.s32 %s3901_s20, %s5178_s19 }
  0x43   : > { %s2749_s2 = sadd.s32 4294967295, %s2748_s28  ;;  %p44_p4 = scmp.ge.s32.totalorder %s5180_s29, 2 }
  0x44   : > { %p76_p7 = scmp.gt.s32.totalorder %s2749_s2, 0  ;;  %s2750_s26 = sshll.u32 %s5178_s19, 3 }
  0x45   : > { %p94_p9 = scmp.ne.s32.totalorder %s3877_s14, %s3873_s13  ;;  %s5182_s29 = smov (%p44_p4, %s5180_s29), 0 }
  0x46   : > { %5093 = sst [smem:[#allocation31_spill]] %s5182_s29  ;;  %s5184_s2 = smov (!%p76_p7, %s2749_s2), 0 }
  0x47   : > { %s4109_s9 = ssub.s32 %s3905_s21, %s5182_s29  ;;  %s2751_s18 = sadd.s32 4294967295, %s2750_s26 }
  0x48   : > { %5094 = sst [smem:[#allocation32_spill]] %s4109_s9  ;;  %s4112_s8 = sor.u32 %s47_s24, %s4109_s9 }
  0x49   : > { %p80_p10 = scmp.gt.s32.totalorder %s2751_s18, 0  ;;  %p4117_p12 = por %p94_p9, %p5055_p2 }
  0x4a   : > { %p100_p13 = scmp.ne.s32.totalorder %s3873_s13, %s3869_s12  ;;  %s4123_s3 = sadd.s32 8, %s2748_s28 }
  0x4b   : > { %s5186_s18 = smov (!%p80_p10, %s2751_s18), 0  ;;  %5096 = sst [smem:[#allocation33_spill]] %s4123_s3 }
  0x4c   : > { %s83_s29 = ssub.s32 %s5184_s2, %s5186_s18  ;;  %p5097_p3 = scmp.eq.s32.totalorder %s4047_s23, 0 }
  0x4d   : > { %s84_s24 = sor.u32 %s83_s29, %s4109_s9  ;;  %s4133_s30 = sadd.s32 8, %s2750_s26 }
  0x4e   : > { %p4129_p5 = por %p100_p13, %p5097_p3  ;;  %p85_p1 = scmp.eq.s32.totalorder %s84_s24, 0 }
  0x4f   : > { %p5054_p7 = scmp.lt.s32.totalorder %s3909_s22, 4  ;;  %s4141_s28 = sshll.u32 %s3905_s21, 5 }
  0x50   : > { %s5098_s19 = scalar_select %p4129_p5, 1, 0 }
  0x51   : > { %s4138_s12 = scalar_select %p85_p1, %s3877_s14, %s87_s4  }
  0x52   : > { %5099 = sst [smem:[#allocation34_spill]] %s5098_s19  ;;  %s386_s18 = sand.u32 1, %s3909_s22  }
  0x53   : > { %s388_s29 = sand.u32 1, %s3877_s14   ;;  %s2767_s9 = sshll.u32 %s5184_s2, 1 }
  0x54   : > { %s2764_s13 = sshll.u32 %s388_s29, 4  ;;  %s400_s10 = sadd.s32 %s2767_s9, %s4141_s28 }
  0x55   : > { %s2769_s3 = sshll.u32 %s400_s10, 7  ;;  %s390_s19 = scalar_lea.vmem [#allocation6], %s2764_s13 }
  0x56   : > { %s403_s24 = sshll.u32 %s390_s19, 4  ;;  %s5100_s1 = sld [smem:[#allocation38_spill]]  ;;  %s4151_s24 = int_to_ptr.vmem [resolvable:$true] %s403_s24 }
  0x57   : > { %p4157_p9 = pnand %p5054_p7, %p4117_p12  ;;  %s3914_s2 = smov [#allocation11]  }
  0x58   : > { %s329_s10 = sshll.u32 %s3914_s2, 4  ;;  %s4163_s0 = scalar_lea.sflag [#allocation7], %s386_s18  ;;  %s4161_s10 = int_to_ptr.vmem [resolvable:$true] %s329_s10 }
  0x59   : > { %p3603_p13 = pneg %p4157_p9 }
  0x5c   : > { %s4149_s26 = scalar_lea.hbm %s5100_s1, %s2769_s3  ;;  %s3606_s6 = scalar_lea.hbm %s5100_s1, 8192 }
  0x5d   : > { %s3601_s3 = scalar_lea.hbm %s4149_s26, 256  ;;  %p3607_p12 = scmp.lt.u32.totalorder %s4149_s26, %s5100_s1 }
  0x5e   : > { %p3602_p10 = scmp.ne.s32.totalorder %s4149_s26, %s3601_s3  ;;  %p3608_p4 = scmp.lt.u32.totalorder %s3606_s6, %s3601_s3 }
  0x5f   : > { %p3610_p7 = scmp.lt.u32.totalorder %s3601_s3, %s4149_s26 }
  0x60   : > { %p3604_p3 = pnand %p3603_p13, %p3602_p10  ;;  %p3609_p0 = por %p3608_p4, %p3607_p12 }
  0x62   : > { %p3605_p1 = pneg %p3604_p3  ;;  %p3611_p2 = por %p3610_p7, %p3609_p0 }
  0x64   : > { %p3612_p11 = pnand %p3611_p2, %p3605_p1 }
  0x66   : > { %3615 = shalt.err (!%p3612_p11)
}
  0x67   : > { %s3616_s18 = scalar_lea.vmem %s4151_s24, 256  ;;  %s3915_s29 = smov [#allocation6]  }
  0x68   : > { %p3617_p10 = scmp.ne.s32.totalorder %s4151_s24, %s3616_s18  ;;  %s3621_s2 = sshll.u32 %s3915_s29, 4  ;;  %s3622_s2 = int_to_ptr.vmem [resolvable:$false] %s3621_s2 }
  0x69   : > { %s3623_s11 = scalar_lea.vmem %s3622_s2, 512  ;;  %p3624_p6 = scmp.lt.s32.totalorder %s4151_s24, %s3622_s2 }
  0x6a   : > { %p3619_p3 = pnand %p3617_p10, %p3603_p13  ;;  %p3625_p4 = scmp.lt.s32.totalorder %s3623_s11, %s3616_s18 }
  0x6c   : > { %p3620_p5 = pneg %p3619_p3  ;;  %p3626_p12 = por %p3625_p4, %p3624_p6 }
  0x6e   : > { %p3627_p0 = pnand %p3626_p12, %p3620_p5 }
  0x70   : > { %3630 = shalt.err (!%p3627_p0)
}
  0x71   : > { %s5059_s3 = smov 128   ;;  %s5061_s13 = smov 8  }
  0x72   : > { %3346 = dma.hbm_to_vmem [thread:$0]  (!%p4157_p9), %s4149_s26, 256, %s4151_s24, %s4163_s0, %s5059_s3, %s5059_s3, %s5061_s13  }
  0x73   : > { %s5102_s5 = sld [smem:[#allocation42_spill]] }
  0x79   : > { %s3631_s9 = scalar_lea.hbm %s5102_s5, 9216 }
  0x7a   : > { %p3632_p6 = scmp.ne.s32.totalorder %s5102_s5, %s3631_s9  ;;  %p3638_p5 = scmp.lt.u32.totalorder %s3631_s9, %s5102_s5 }
  0x7c   : > { %p3634_p2 = pnand %p3632_p6, %p4073_p8 }
  0x7e   : > { %p3635_p11 = pneg %p3634_p2 }
  0x80   : > { %p3640_p7 = pnand %p3638_p5, %p3635_p11 }
  0x82   : > { %3643 = shalt.err (!%p3640_p7)
}
  0x83   : > { %s3644_s24 = scalar_lea.vmem %s4161_s10, 9216  ;;  %p3652_p10 = scmp.lt.s32.totalorder %s4161_s10, %s4161_s10 }
  0x84   : > { %p3645_p9 = scmp.ne.s32.totalorder %s4161_s10, %s3644_s24  ;;  %p3653_p3 = scmp.lt.s32.totalorder %s3644_s24, %s3644_s24 }
  0x86   : > { %p3647_p13 = pnand %p3645_p9, %p4073_p8  ;;  %p3654_p4 = por %p3653_p3, %p3652_p10 }
  0x88   : > { %p3648_p1 = pneg %p3647_p13 }
  0x8a   : > { %p3655_p12 = pnand %p3654_p4, %p3648_p1 }
  0x8c   : > { %3658 = shalt.err (!%p3655_p12)
}
  0x8d   : > { %p5103_p0 = scmp.ne.s32.totalorder %s5089_s27, 0  ;;  %s5104_s26 = smov 4  }
  0x8e   : > { %s5105_s4 = smov 64   ;;  %s3918_s9 = smov [#allocation12]  }
  0x8f   : > { %3336 = dma.hbm_to_vmem [thread:$0]  (!%p5103_p0), %s5102_s5, 9216, %s4161_s10, [#allocation10], %s5105_s4, %s5105_s4, %s5104_s26  }
  0x90   : > { %s345_s18 = sshll.u32 %s3918_s9, 4  ;;  %s5106_s7 = sld [smem:[#allocation44_spill]]  ;;  %s346_s18 = int_to_ptr.vmem [resolvable:$true] %s345_s18 }
  0x96   : > { %s3659_s11 = scalar_lea.hbm %s5106_s7, 1024 }
  0x97   : > { %p3660_p6 = scmp.ne.s32.totalorder %s5106_s7, %s3659_s11  ;;  %p3666_p5 = scmp.lt.u32.totalorder %s3659_s11, %s5106_s7 }
  0x99   : > { %p3662_p2 = pnand %p3660_p6, %p4073_p8 }
  0x9b   : > { %p3663_p11 = pneg %p3662_p2 }
  0x9d   : > { %p3668_p7 = pnand %p3666_p5, %p3663_p11 }
  0x9f   : > { %3671 = shalt.err (!%p3668_p7)
}
  0xa0   : > { %s3672_s10 = scalar_lea.vmem %s346_s18, 1024  ;;  %p3680_p10 = scmp.lt.s32.totalorder %s346_s18, %s346_s18 }
  0xa1   : > { %p3673_p9 = scmp.ne.s32.totalorder %s346_s18, %s3672_s10  ;;  %p3681_p3 = scmp.lt.s32.totalorder %s3672_s10, %s3672_s10 }
  0xa3   : > { %p3675_p13 = pnand %p3673_p9, %p4073_p8  ;;  %p3682_p4 = por %p3681_p3, %p3680_p10 }
  0xa5   : > { %p3676_p1 = pneg %p3675_p13 }
  0xa7   : > { %p3683_p12 = pnand %p3682_p4, %p3676_p1 }
  0xa9   : > { %3686 = shalt.err (!%p3683_p12)
}
  0xaa   : > { %3339 = dma.hbm_to_vmem [thread:$0]  (!%p5103_p0), %s5106_s7, 1024, %s346_s18, [#allocation13], %s5105_s4, %s5105_s4, %s5104_s26  }
  0xab   : > { %s2747_s27 = sadd.s32 4294967294, %s3909_s22   ;;  %s51_s25 = sadd.s32 1, %s3889_s17 }
  0xac   : > { %p5107_p8 = scmp.eq.s32.totalorder %s4112_s8, 0  ;;  %p58_p6 = scmp.ne.s32.totalorder %s3889_s17, %s3885_s16 }
  0xad   : > { %p64_p2 = scmp.ne.s32.totalorder %s3885_s16, %s3881_s15  ;;  %p294_p11 = scmp.eq.s32.totalorder %s2747_s27, 3 }
  0xae   : > { %s4246_s13 = scalar_select %p5107_p8, %s3889_s17, %s51_s25  }
  0xaf   : > { %s362_s6 = sand.u32 1, %s3889_s17   ;;  %p5109_p5 = scmp.eq.s32.totalorder %s3909_s22, 0 }
  0xb0   : > { %5108 = sst [smem:[#allocation35_spill]] %s4246_s13  ;;  %p5110_p9 = scmp.eq.s32.totalorder %s4047_s23, 0 }
  0xb1   : > { %p60_p7 = por %p5109_p5, %p58_p6  ;;  %p5112_p1 = scmp.eq.s32.totalorder %s4047_s23, 3 }
  0xb2   : > { %p4257_p13 = por %p5110_p9, %p64_p2  ;;  %p4267_p0 = por %p294_p11, %p64_p2 }
  0xb3   : > { %p4263_p10 = por %p5112_p1, %p58_p6  ;;  %s2759_s4 = sshll.u32 %s362_s6, 7 }
  0xb4   : > { %s5114_s8 = scalar_select %p4267_p0, 1, 0 }
  0xb5   : > { %s5113_s26 = scalar_select %p4263_p10, 1, 0 }
  0xb6   : > { %5115 = sst [smem:[#allocation36_spill]] %s5114_s8  ;;  %s2884_s9 = sshll.u32 %s3901_s20, 4 }
  0xb7   : > { %s373_s18 = sadd.s32 %s2884_s9, %s4141_s28  ;;  %s366_s29 = scalar_lea.vmem [#allocation3], %s2759_s4 }
  0xb8   : > { %s376_s2 = sshll.u32 %s366_s29, 4  ;;  %s2763_s11 = sshll.u32 %s373_s18, 7  ;;  %s4273_s2 = int_to_ptr.vmem [resolvable:$true] %s376_s2 }
  0xb9   : > { %s5116_s1 = sld [smem:[#allocation37_spill]]  ;;  %p5117_p3 = scmp.lt.s32.totalorder %s3909_s22, 4 }
  0xba   : > { %s4286_s25 = scalar_lea.sflag [#allocation4], %s362_s6 }
  0xbb   : > { %p4282_p4 = pnand %p5117_p3, %p60_p7 }
  0xbd   : > { %p3689_p8 = pneg %p4282_p4 }
  0xbf   : > { %s4278_s3 = scalar_lea.hbm %s5116_s1, %s2763_s11  ;;  %s3692_s29 = scalar_lea.hbm %s5116_s1, 8192 }
  0xc0   : > { %s3687_s4 = scalar_lea.hbm %s4278_s3, 2048  ;;  %p3693_p11 = scmp.lt.u32.totalorder %s4278_s3, %s5116_s1 }
  0xc1   : > { %p3688_p12 = scmp.ne.s32.totalorder %s4278_s3, %s3687_s4  ;;  %p3694_p5 = scmp.lt.u32.totalorder %s3692_s29, %s3687_s4 }
  0xc2   : > { %p3696_p9 = scmp.lt.u32.totalorder %s3687_s4, %s4278_s3 }
  0xc3   : > { %p3690_p6 = pnand %p3689_p8, %p3688_p12  ;;  %p3695_p7 = por %p3694_p5, %p3693_p11 }
  0xc5   : > { %p3691_p2 = pneg %p3690_p6  ;;  %p3697_p1 = por %p3696_p9, %p3695_p7 }
  0xc7   : > { %p3698_p3 = pnand %p3697_p1, %p3691_p2 }
  0xc9   : > { %3701 = shalt.err (!%p3698_p3)
}
  0xca   : > { %s3702_s6 = scalar_lea.vmem %s4273_s2, 2048  ;;  %s3919_s10 = smov [#allocation3]  }
  0xcb   : > { %p3703_p12 = scmp.ne.s32.totalorder %s4273_s2, %s3702_s6  ;;  %s3707_s9 = sshll.u32 %s3919_s10, 4  ;;  %s3708_s9 = int_to_ptr.vmem [resolvable:$false] %s3707_s9 }
  0xcc   : > { %s3709_s18 = scalar_lea.vmem %s3708_s9, 4096  ;;  %p3710_p10 = scmp.lt.s32.totalorder %s4273_s2, %s3708_s9 }
  0xcd   : > { %p3705_p6 = pnand %p3703_p12, %p3689_p8  ;;  %p3711_p11 = scmp.lt.s32.totalorder %s3709_s18, %s3702_s6 }
  0xcf   : > { %p3706_p0 = pneg %p3705_p6  ;;  %p3712_p5 = por %p3711_p11, %p3710_p10 }
  0xd1   : > { %p3713_p7 = pnand %p3712_p5, %p3706_p0 }
  0xd3   : > { %3716 = shalt.err (!%p3713_p7)
}
  0xd4   : > { %s5119_s4 = smov 8   ;;  %s5120_s29 = smov 128  }
  0xd5   : > { %s5121_s11 = sld [smem:[#allocation23_spill]]  ;;  %s5122_s24 = sld [smem:[#allocation33_spill]] }
  0xd6   : > { %s5123_s10 = sld [smem:[#allocation22_spill]]  ;;  %s5125_s6 = sld [smem:[#allocation32_spill]] }
  0xd7   : > { %s5124_s9 = sld [smem:[#allocation21_spill]]  ;;  %p5127_p0 = scmp.lt.s32.totalorder %s4133_s30, 15 }
  0xd8   : > { %3343 = dma.hbm_to_vmem [thread:$0]  (!%p4282_p4), %s4278_s3, 2048, %s4273_s2, %s4286_s25, %s5120_s29, %s5120_s29, %s5119_s4  }
  0xd9   : > { %s5190_s30 = smov (!%p5127_p0, %s4133_s30), 15  ;;  %p5128_p9 = scmp.eq.s32.totalorder %s3909_s22, 0 }
  0xda   : > { %p5129_p12 = scmp.eq.s32.totalorder %s4047_s23, 0  ;;  %s5131_s13 = sld [smem:[#allocation39_spill]] }
  0xdb   : > { %s123_s27 = sadd.s32 1, %s5121_s11  ;;  %p5126_p10 = scmp.lt.s32.totalorder %s5122_s24, 15 }
  0xdc   : > { %p130_p8 = scmp.ne.s32.totalorder %s5121_s11, %s5123_s10  ;;  %s415_s1 = sand.u32 1, %s5121_s11  }
  0xdd   : > { %s5188_s24 = smov (!%p5126_p10, %s5122_s24), 15  ;;  %p136_p2 = scmp.ne.s32.totalorder %s5123_s10, %s5124_s9 }
  0xde   : > { %s119_s18 = ssub.s32 %s5188_s24, %s5190_s30  ;;  %p132_p1 = por %p130_p8, %p5128_p9 }
  0xdf   : > { %s120_s5 = sor.u32 %s119_s18, %s5125_s6  ;;  %p4334_p6 = por %p136_p2, %p5129_p12 }
  0xe0   : > { %p121_p3 = scmp.eq.s32.totalorder %s120_s5, 0  ;;  %s2770_s2 = sshll.u32 %s415_s1, 4 }
  0xe1   : > { %s5130_s7 = scalar_select %p4334_p6, 1, 0 }
  0xe2   : > { %s2772_s3 = sshll.u32 %s5188_s24, 1  ;;  %s5192_s11 = smov (!%p121_p3, %s5121_s11), %s123_s27 }
  0xe3   : > { %s427_s25 = sadd.s32 %s2772_s3, %s4141_s28  ;;  %s417_s20 = scalar_lea.vmem [#allocation8], %s2770_s2 }
  0xe4   : > { %s2774_s21 = sshll.u32 %s427_s25, 7  ;;  %s430_s10 = sshll.u32 %s417_s20, 4  ;;  %s4347_s10 = int_to_ptr.vmem [resolvable:$true] %s430_s10 }
  0xe5   : > { %s5132_s8 = smov %s5131_s13  ;;  %s4345_s6 = scalar_lea.hbm %s5131_s13, %s2774_s21 }
  0xe6   : > { %p5133_p4 = scmp.lt.s32.totalorder %s3909_s22, 4  ;;  %s3717_s28 = scalar_lea.hbm %s4345_s6, 256 }
  0xe7   : > { %p3718_p5 = scmp.ne.s32.totalorder %s4345_s6, %s3717_s28  ;;  %s3722_s13 = scalar_lea.hbm %s5132_s8, 8192 }
  0xe8   : > { %p4351_p11 = pnand %p5133_p4, %p132_p1  ;;  %p3723_p8 = scmp.lt.u32.totalorder %s4345_s6, %s5132_s8 }
  0xe9   : > { %p3724_p2 = scmp.lt.u32.totalorder %s3722_s13, %s3717_s28  ;;  %p3726_p1 = scmp.lt.u32.totalorder %s3717_s28, %s4345_s6 }
  0xea   : > { %p3719_p7 = pneg %p4351_p11 }
  0xeb   : > { %p3725_p9 = por %p3724_p2, %p3723_p8 }
  0xec   : > { %p3720_p10 = pnand %p3719_p7, %p3718_p5 }
  0xed   : > { %p3727_p3 = por %p3726_p1, %p3725_p9 }
  0xee   : > { %p3721_p0 = pneg %p3720_p10 }
  0xf0   : > { %p3728_p12 = pnand %p3727_p3, %p3721_p0 }
  0xf2   : > { %3731 = shalt.err (!%p3728_p12)
}
  0xf3   : > { %s3732_s27 = scalar_lea.vmem %s4347_s10, 256  ;;  %s3920_s18 = smov [#allocation8]  }
  0xf4   : > { %p3733_p4 = scmp.ne.s32.totalorder %s4347_s10, %s3732_s27  ;;  %s3737_s2 = sshll.u32 %s3920_s18, 4  ;;  %s3738_s2 = int_to_ptr.vmem [resolvable:$false] %s3737_s2 }
  0xf5   : > { %s3739_s3 = scalar_lea.vmem %s3738_s2, 512  ;;  %p3740_p6 = scmp.lt.s32.totalorder %s4347_s10, %s3738_s2 }
  0xf6   : > { %p3735_p5 = pnand %p3733_p4, %p3719_p7  ;;  %p3741_p8 = scmp.lt.s32.totalorder %s3739_s3, %s3732_s27 }
  0xf8   : > { %p3736_p10 = pneg %p3735_p5  ;;  %p3742_p2 = por %p3741_p8, %p3740_p6 }
  0xfa   : > { %p3743_p9 = pnand %p3742_p2, %p3736_p10 }
  0xfc   : > { %3746 = shalt.err (!%p3743_p9)
}
  0xfd   : > { %3349 = dma.hbm_to_vmem [thread:$0]  (!%p4351_p11), %s4345_s6, 256, %s4347_s10, %s4163_s0, %s5120_s29, %s5120_s29, %s5119_s4  }
  0xfe   : > { %s5135_s25 = sld [smem:[#allocation29_spill]] }
 0x104   : > { %p5136_p7 = scmp.ne.s32.totalorder %s5135_s25, 0 }
 0x105   : > { %s4387_s9 = sand.u32 (!%p5136_p7), 1, %s3885_s16  }
 0x106   : > { %442 = sbr.rel (%p5136_p7) target bundleno = 1251 (0x4e3), region = 56  ;;  %s2776_s30 = sshll.u32 (!%p5136_p7), %s4387_s9, 7 }
 0x107   : > { %s445_s28 = scalar_lea.sflag (!%p5136_p7), [#allocation4], %s4387_s9  ;;  %s4393_s5 = scalar_lea.vmem (!%p5136_p7), [#allocation3], %s2776_s30 }
 0x10d   : > { %3832 = dma.done.wait (%p4257_p13), %s445_s28, 2048  }
 0x10e   : > { %3834 = vsyncadd (%p4257_p13), %s445_s28, 4294965248  ;;  %s5137_s0 = sld [smem:[#allocation24_spill]]  ;;  %s5138_s4 = sld [smem:[#allocation34_spill]] }
 0x10f   : > { %s453_s29 = sand.u32 1, %s4047_s23  }
 0x110   : > { %s454_s20 = scalar_lea.sflag [#allocation7], %s453_s29 }
 0x114   : > { %s455_s10 = sand.u32 1, %s5137_s0   ;;  %p5139_p6 = scmp.ne.s32.totalorder %s5138_s4, 0 }
 0x115   : > { %s2777_s6 = sshll.u32 %s455_s10, 4 }
 0x116   : > { %s457_s21 = scalar_lea.vmem [#allocation6], %s2777_s6 }
 0x117   : > { %3836 = dma.done.wait (%p5139_p6), %s454_s20, 256  }
 0x118   : > { %3838 = vsyncadd (%p5139_p6), %s454_s20, 4294967040  ;;  %s5140_s13 = sld [smem:[#allocation22_spill]]  ;;  %p5141_p13 = scmp.ne.s32.totalorder %s5130_s7, 0 }
 0x11e   : > { %s464_s1 = sand.u32 1, %s5140_s13  }
 0x11f   : > { %s4406_s24 = sshll.u32 %s464_s1, 4 }
 0x120   : > { %s466_s19 = scalar_lea.vmem [#allocation8], %s4406_s24 }
 0x121   : > { %3840 = dma.done.wait (%p5141_p13), %s454_s20, 256  }
 0x122   : > { %3842 = vsyncadd (%p5141_p13), %s454_s20, 4294967040  ;;  %p5142_p11 = scmp.eq.s32.totalorder %s4047_s23, 0 }
 0x124   : > { %3844 = dma.done.wait (%p5142_p11), [#allocation10], 10240   ;;  %p5143_p0 = pmov %p5142_p11 }
 0x126   : > { %3846 = vsyncadd (%p5143_p0), [#allocation10], 4294957056  ;;  %p5144_p1 = pmov %p5143_p0 }
 0x127   : > { %p5145_p3 = pmov %p5143_p0 }
 0x128   : > { %3848 = dma.done.wait (%p5144_p1), [#allocation13], 1024  }
 0x129   : > { %3850 = vsyncadd (%p5145_p3), [#allocation13], 4294966272  ;;  %v3485_v0 = vld [vmem:[#allocation9] sm:$0xff]   ;;  %v3486_v1 = vld [vmem:[#allocation9 + $0x8] sm:$0xff]   ;;  %v742_v38 = vlaneseq  ;;  %s5146_s27 = sld [smem:[#allocation41_spill]]  ;;  %s4544_s18 = scalar_lea.vmem [#allocation14], %s2776_s30 }
 0x12a   : > { %3194 = vmatprep.subr.bf16.mxu0 %v3485_v0  ;;  %v3487_v2 = vld [vmem:[#allocation9 + $0x10] sm:$0xff]   ;;  %v3488_v3 = vld [vmem:[#allocation9 + $0x18] sm:$0xff]   ;;  %v3489_v7 = vld [vmem:[#allocation9 + $0x20] sm:$0xff]   ;;  %s5147_s2 = sld [smem:[#allocation25_spill]] }
 0x12b   : > { %3195 = vmatpush3.bf16.msra.mxu0 %v3485_v0  ;;  %v550_v4 = vld [vmem:[%s457_s21] sm:$0xff]  ;;  %v551_v5 = vld [vmem:[%s457_s21 + $0x8] sm:$0xff]  ;;  %v743_v39 = vshrl.u32 %v742_v38, 7 }
 0x12c   : > { %3196 = vmatprep.subr.bf16.mxu0 %v3486_v1  ;;  %v554_v6 = vpack.c.bf16 %v551_v5, %v550_v4  ;;  %v3490_v8 = vld [vmem:[#allocation9 + $0x28] sm:$0xff]   ;;  %v3491_v9 = vld [vmem:[#allocation9 + $0x30] sm:$0xff]   ;;  %v3492_v10 = vld [vmem:[#allocation9 + $0x38] sm:$0xff]  }
 0x12d   : > { %v4422_v11 = vld [vmem:[%s4393_s5] sm:$0xff]  ;;  %v4425_v12 = vld [vmem:[%s4393_s5 + $0x8] sm:$0xff]  ;;  %v4428_v13 = vld [vmem:[%s4393_s5 + $0x10] sm:$0xff]  ;;  %v4489_v40 = vsub.s32 0, %v743_v39  ;;  %v4494_v42 = vsub.s32 1, %v743_v39 }
 0x12e   : > { %3210 = vmatprep.mubr.bf16.mxu0 %v554_v6  ;;  %v4431_v14 = vld [vmem:[%s4393_s5 + $0x18] sm:$0xff]  ;;  %v555_v15 = vpack.c.bf16 %v4425_v12, %v4422_v11  ;;  %v4438_v17 = vld [vmem:[%s4393_s5 + $0x20] sm:$0xff]  ;;  %v4441_v18 = vld [vmem:[%s4393_s5 + $0x28] sm:$0xff] }
 0x12f   : > { %3197 = vmatpush3.bf16.msra.mxu0 %v3486_v1  ;;  %v556_v16 = vpack.c.bf16 %v4431_v14, %v4428_v13  ;;  %v4444_v19 = vld [vmem:[%s4393_s5 + $0x30] sm:$0xff]  ;;  %v4447_v20 = vld [vmem:[%s4393_s5 + $0x38] sm:$0xff]  ;;  %v557_v21 = vpack.c.bf16 %v4441_v18, %v4438_v17  ;;  %v4454_v23 = vld [vmem:[%s4393_s5 + $0x40] sm:$0xff] }
 0x130   : > { %3198 = vmatprep.subr.bf16.mxu0 %v3487_v2  ;;  %v558_v22 = vpack.c.bf16 %v4447_v20, %v4444_v19  ;;  %v4457_v24 = vld [vmem:[%s4393_s5 + $0x48] sm:$0xff]  ;;  %v4460_v25 = vld [vmem:[%s4393_s5 + $0x50] sm:$0xff]  ;;  %v4463_v26 = vld [vmem:[%s4393_s5 + $0x58] sm:$0xff]  ;;  %p2791_p12 = scmp.ne.s32.totalorder %s5147_s2, 0 }
 0x131   : > { %v559_v27 = vpack.c.bf16 %v4457_v24, %v4454_v23  ;;  %v560_v28 = vpack.c.bf16 %v4463_v26, %v4460_v25  ;;  %v4470_v29 = vld [vmem:[%s4393_s5 + $0x60] sm:$0xff]  ;;  %v4473_v30 = vld [vmem:[%s4393_s5 + $0x68] sm:$0xff]  ;;  %v4476_v31 = vld [vmem:[%s4393_s5 + $0x70] sm:$0xff] }
 0x132   : > { %v4479_v32 = vld [vmem:[%s4393_s5 + $0x78] sm:$0xff]  ;;  %v561_v33 = vpack.c.bf16 %v4473_v30, %v4470_v29  ;;  %v552_v35 = vld [vmem:[%s466_s19] sm:$0xff] }
 0x133   : > { %3199 = vmatpush3.bf16.msra.mxu0 %v3487_v2  ;;  %v562_v34 = vpack.c.bf16 %v4479_v32, %v4476_v31  ;;  %v553_v36 = vld [vmem:[%s466_s19 + $0x8] sm:$0xff]  ;;  %v564_v41 = vld [vmem:[%s5146_s27] sm:$0x3] }
 0x134   : > { %3200 = vmatprep.subr.bf16.mxu0 %v3488_v3  ;;  %v563_v37 = vpack.c.bf16 %v553_v36, %v552_v35  ;;  %v4497_v43 = vrot.slane %v564_v41, %v4489_v40  ;;  %v4500_v44 = vrot.slane %v564_v41, %v4494_v42 }
 0x137   : > { %3201 = vmatpush3.bf16.msra.mxu0 %v3488_v3 }
 0x138   : > { %3202 = vmatprep.subr.bf16.mxu0 %v3489_v7 }
 0x13b   : > { %3203 = vmatpush3.bf16.msra.mxu0 %v3489_v7 }
 0x13c   : > { %3204 = vmatprep.subr.bf16.mxu0 %v3490_v8 }
 0x13f   : > { %3205 = vmatpush3.bf16.msra.mxu0 %v3490_v8 }
 0x140   : > { %3206 = vmatprep.subr.bf16.mxu0 %v3491_v9 }
 0x143   : > { %3207 = vmatpush3.bf16.msra.mxu0 %v3491_v9 }
 0x144   : > { %3208 = vmatprep.subr.bf16.mxu0 %v3492_v10 }
 0x147   : > { %3209 = vmatpush3.bf16.msra.mxu0 %v3492_v10 }
 0x14a   : > { %3211 = vmatmul.mubr.bf16.vlgmr.msra.gmra.mrb[0].mxu0 %v555_v15 }
 0x14b   : > { %3214 = vmatprep.mubr.bf16.mxu0 %v556_v16 }
 0x152   : > { %3215 = vmatmul.mubr.bf16.gmra.mrb[4].mxu0 %v557_v21 }
 0x153   : > { %3218 = vmatprep.mubr.bf16.mxu0 %v558_v22 }
 0x15a   : > { %3219 = vmatmul.mubr.bf16.gmra.mrb[8].mxu0 %v559_v27 }
 0x15b   : > { %3222 = vmatprep.mubr.bf16.mxu0 %v560_v28 }
 0x162   : > { %3223 = vmatmul.mubr.bf16.gmra.mrb[12].mxu0 %v561_v33 }
 0x163   : > { %3226 = vmatprep.mubr.bf16.mxu0 %v562_v34 }
 0x16a   : > { %3227 = vmatmul.mubr.bf16.gmra.mrb[16].mxu0 %v563_v37 }
 0x21d   : > { %v3212_v45 = vpop.f32.mrb[0].mxu0 }
 0x21e   : > { %v748_v46 = vmul.f32 %v3212_v45, %v4497_v43  ;;  %v663_v47 = vpop.f32.mrb[1].mxu0 }
 0x21f   : > { %v746_v48 = vmul.f32 %v4497_v43, %v663_v47  ;;  %v3213_v49 = vpop.f32.mrb[2].mxu0 }
 0x220   : > { %v772_v50 = vadd.f32 %v4500_v44, %v748_v46  ;;  %v749_v51 = vmul.f32 %v3213_v49, %v4497_v43  ;;  %v666_v52 = vpop.f32.mrb[3].mxu0 }
 0x221   : > { %v770_v53 = vadd.f32 %v4500_v44, %v746_v48  ;;  %v747_v54 = vmul.f32 %v4497_v43, %v666_v52 }
 0x222   : > { %v773_v55 = vadd.f32 %v4500_v44, %v749_v51  ;;  %v792_v57 = vmax.f32 %v772_v50, 0.0 }
 0x223   : > { %v771_v56 = vadd.f32 %v4500_v44, %v747_v54  ;;  %v790_v59 = vmax.f32 %v770_v53, 0.0 }
 0x224   : > { %v793_v58 = vmax.f32 %v773_v55, 0.0 }
 0x225   : > { %v791_v60 = vmax.f32 %v771_v56, 0.0  ;;  %v3216_v61 = vpop.f32.mrb[4].mxu0 }
 0x226   : > { %v811_v62 = vpack.c.bf16 %v793_v58, %v792_v57  ;;  %v752_v63 = vmul.f32 %v3216_v61, %v4497_v43  ;;  %v679_v0 = vpop.f32.mrb[5].mxu0 }
 0x227   : > { %v810_v1 = vpack.c.bf16 %v791_v60, %v790_v59  ;;  %v750_v2 = vmul.f32 %v4497_v43, %v679_v0  ;;  %v3217_v3 = vpop.f32.mrb[6].mxu0 }
 0x228   : > { %821 = vst [vmem:[#allocation2 + $0x8] sm:$0xff] %v811_v62  ;;  %v776_v4 = vadd.f32 %v4500_v44, %v752_v63  ;;  %v753_v5 = vmul.f32 %v3217_v3, %v4497_v43  ;;  %v682_v6 = vpop.f32.mrb[7].mxu0 }
 0x229   : > { %820 = vst [vmem:[#allocation2] sm:$0xff] %v810_v1  ;;  %v774_v7 = vadd.f32 %v4500_v44, %v750_v2  ;;  %v751_v8 = vmul.f32 %v4497_v43, %v682_v6 }
 0x22a   : > { %v777_v9 = vadd.f32 %v4500_v44, %v753_v5  ;;  %v796_v15 = vmax.f32 %v776_v4, 0.0 }
 0x22b   : > { %v775_v10 = vadd.f32 %v4500_v44, %v751_v8  ;;  %v794_v21 = vmax.f32 %v774_v7, 0.0 }
 0x22c   : > { %v797_v16 = vmax.f32 %v777_v9, 0.0 }
 0x22d   : > { %v795_v22 = vmax.f32 %v775_v10, 0.0  ;;  %v3220_v27 = vpop.f32.mrb[8].mxu0 }
 0x22e   : > { %v813_v28 = vpack.c.bf16 %v797_v16, %v796_v15  ;;  %v756_v33 = vmul.f32 %v3220_v27, %v4497_v43  ;;  %v695_v34 = vpop.f32.mrb[9].mxu0 }
 0x22f   : > { %v812_v35 = vpack.c.bf16 %v795_v22, %v794_v21  ;;  %v754_v36 = vmul.f32 %v4497_v43, %v695_v34  ;;  %v3221_v37 = vpop.f32.mrb[10].mxu0 }
 0x230   : > { %823 = vst [vmem:[#allocation2 + $0x18] sm:$0xff] %v813_v28  ;;  %v780_v38 = vadd.f32 %v4500_v44, %v756_v33  ;;  %v757_v39 = vmul.f32 %v3221_v37, %v4497_v43  ;;  %v698_v41 = vpop.f32.mrb[11].mxu0 }
 0x231   : > { %822 = vst [vmem:[#allocation2 + $0x10] sm:$0xff] %v812_v35  ;;  %v778_v45 = vadd.f32 %v4500_v44, %v754_v36  ;;  %v755_v46 = vmul.f32 %v4497_v43, %v698_v41 }
 0x232   : > { %v781_v47 = vadd.f32 %v4500_v44, %v757_v39  ;;  %v800_v49 = vmax.f32 %v780_v38, 0.0 }
 0x233   : > { %v779_v48 = vadd.f32 %v4500_v44, %v755_v46  ;;  %v798_v51 = vmax.f32 %v778_v45, 0.0 }
 0x234   : > { %v801_v50 = vmax.f32 %v781_v47, 0.0  ;;  %v3921_v47 = vmov (!%p2791_p12), 0  }
 0x235   : > { %v799_v52 = vmax.f32 %v779_v48, 0.0  ;;  %v3224_v53 = vpop.f32.mrb[12].mxu0  ;;  %834 = vst [vmem:[#allocation2] sm:$0xff] (!%p2791_p12), %v3921_v47 }
 0x236   : > { %v815_v54 = vpack.c.bf16 %v801_v50, %v800_v49  ;;  %v760_v55 = vmul.f32 %v3224_v53, %v4497_v43  ;;  %v711_v56 = vpop.f32.mrb[13].mxu0 }
 0x237   : > { %v814_v57 = vpack.c.bf16 %v799_v52, %v798_v51  ;;  %v758_v58 = vmul.f32 %v4497_v43, %v711_v56  ;;  %v3225_v59 = vpop.f32.mrb[14].mxu0 }
 0x238   : > { %825 = vst [vmem:[#allocation2 + $0x28] sm:$0xff] %v815_v54  ;;  %v784_v60 = vadd.f32 %v4500_v44, %v760_v55  ;;  %v761_v61 = vmul.f32 %v3225_v59, %v4497_v43  ;;  %v714_v62 = vpop.f32.mrb[15].mxu0 }
 0x239   : > { %824 = vst [vmem:[#allocation2 + $0x20] sm:$0xff] %v814_v57  ;;  %v782_v63 = vadd.f32 %v4500_v44, %v758_v58  ;;  %v759_v0 = vmul.f32 %v4497_v43, %v714_v62 }
 0x23a   : > { %v785_v1 = vadd.f32 %v4500_v44, %v761_v61  ;;  %v804_v3 = vmax.f32 %v784_v60, 0.0 }
 0x23b   : > { %v783_v2 = vadd.f32 %v4500_v44, %v759_v0  ;;  %v802_v5 = vmax.f32 %v782_v63, 0.0 }
 0x23c   : > { %v805_v4 = vmax.f32 %v785_v1, 0.0 }
 0x23d   : > { %v803_v6 = vmax.f32 %v783_v2, 0.0  ;;  %v3228_v7 = vpop.f32.mrb[16].mxu0 }
 0x23e   : > { %v817_v8 = vpack.c.bf16 %v805_v4, %v804_v3  ;;  %v764_v9 = vmul.f32 %v3228_v7, %v4497_v43  ;;  %v727_v10 = vpop.f32.mrb[17].mxu0 }
 0x23f   : > { %v816_v15 = vpack.c.bf16 %v803_v6, %v802_v5  ;;  %v762_v16 = vmul.f32 %v4497_v43, %v727_v10  ;;  %v3229_v21 = vpop.f32.mrb[18].mxu0 }
 0x240   : > { %827 = vst [vmem:[#allocation2 + $0x38] sm:$0xff] %v817_v8  ;;  %v788_v22 = vadd.f32 %v4500_v44, %v764_v9  ;;  %v765_v27 = vmul.f32 %v3229_v21, %v4497_v43  ;;  %v730_v28 = vpop.f32.mrb[19].mxu0 }
 0x241   : > { %826 = vst [vmem:[#allocation2 + $0x30] sm:$0xff] %v816_v15  ;;  %v786_v33 = vadd.f32 %v4500_v44, %v762_v16  ;;  %v763_v34 = vmul.f32 %v4497_v43, %v730_v28 }
 0x242   : > { %v789_v35 = vadd.f32 %v4500_v44, %v765_v27  ;;  %v808_v37 = vmax.f32 %v788_v22, 0.0 }
 0x243   : > { %v787_v36 = vadd.f32 %v4500_v44, %v763_v34  ;;  %v806_v39 = vmax.f32 %v786_v33, 0.0  ;;  %833 = sbr.rel (%p2791_p12) target bundleno = 586 (0x24a), region = 84 }
 0x244   : > { %v809_v38 = vmax.f32 %v789_v35, 0.0 }
 0x245   : > { %v807_v41 = vmax.f32 %v787_v36, 0.0 }
 0x246   : > { %v819_v45 = vpack.c.bf16 %v809_v38, %v808_v37 }
 0x247   : > { %v818_v46 = vpack.c.bf16 %v807_v41, %v806_v39 }
 0x248   : > { %829 = vst [vmem:[#allocation2 + $0x48] sm:$0xff] %v819_v45 }
 0x249   : > { %828 = vst [vmem:[#allocation2 + $0x40] sm:$0xff] %v818_v46 }
 0x24a PF: > { %s5148_s3 = sld [smem:[#allocation25_spill]] }
 0x250   : > { %p2792_p4 = scmp.ne.s32.totalorder %s5148_s3, 1 }
 0x251   : > { %v3922_v43 = vmov (!%p2792_p4), 0  }
 0x252   : > { %838 = sbr.rel (%p2792_p4) target bundleno = 601 (0x259), region = 88  ;;  %840 = vst [vmem:[#allocation2 + $0x48] sm:$0xff] (!%p2792_p4), %v3922_v43 }
 0x259 PF: > { %v3493_v44 = vld [vmem:[#allocation11 + $0x40] sm:$0xff]   ;;  %v3497_v51 = vld [vmem:[#allocation11 + $0x48] sm:$0xff]   ;;  %v3501_v55 = vld [vmem:[#allocation11 + $0x50] sm:$0xff]   ;;  %vm913_vm0 = vcmask 1040384   ;;  %vm948_vm1 = vcmask 1047552   ;;  %s5153_s28 = sld [smem:[#allocation43_spill]] }
 0x25a   : > { %v3494_v48 = vld [vmem:[#allocation11 + $0xc0] sm:$0xff]   ;;  %2906 = vmatprep.subr.bf16.mxu1 %v3493_v44  ;;  %v3498_v52 = vld [vmem:[#allocation11 + $0xc8] sm:$0xff]   ;;  %v3502_v56 = vld [vmem:[#allocation11 + $0xd0] sm:$0xff]   ;;  %vm914_vm2 = vsmask.f32 256  ;;  %s5154_s4 = sld [smem:[#allocation45_spill]] }
 0x25b   : > { %v3495_v49 = vld [vmem:[#allocation11] sm:$0xff]   ;;  %2970 = vmatprep.subr.bf16.mxu0 %v3494_v48  ;;  %v3499_v53 = vld [vmem:[#allocation11 + $0x8] sm:$0xff]   ;;  %v3503_v57 = vld [vmem:[#allocation11 + $0x10] sm:$0xff]   ;;  %vm949_vm3 = vsmask.f32 7424  ;;  %s5155_s29 = sld [smem:[#allocation25_spill]] }
 0x25c   : > { %v3496_v50 = vld [vmem:[#allocation11 + $0x80] sm:$0xff]   ;;  %2907 = vmatpush3.bf16.msra.mxu1 %v3495_v49  ;;  %v3500_v54 = vld [vmem:[#allocation11 + $0x88] sm:$0xff]   ;;  %v3504_v58 = vld [vmem:[#allocation11 + $0x90] sm:$0xff]   ;;  %s5156_s10 = sld [smem:[#allocation26_spill]]  ;;  %s2578_s1 = sshll.u32 %s4544_s18, 4  ;;  %s4943_s1 = int_to_ptr.vmem [resolvable:$true] %s2578_s1 }
 0x25d   : > { %2971 = vmatpush3.bf16.msra.mxu0 %v3496_v50  ;;  %2908 = vmatprep.subr.bf16.mxu1 %v3497_v51  ;;  %v3505_v59 = vld [vmem:[#allocation11 + $0x58] sm:$0xff]   ;;  %v3509_v63 = vld [vmem:[#allocation11 + $0x60] sm:$0xff]   ;;  %v3513_v3 = vld [vmem:[#allocation11 + $0x68] sm:$0xff]   ;;  %s5157_s7 = sld [smem:[#allocation46_spill]]  ;;  %s2562_s27 = scalar_lea.sflag [#allocation5], %s4387_s9 }
 0x25e   : > { %2972 = vmatprep.subr.bf16.mxu0 %v3498_v52  ;;  %v3506_v60 = vld [vmem:[#allocation11 + $0xd8] sm:$0xff]   ;;  %v3510_v0 = vld [vmem:[#allocation11 + $0xe0] sm:$0xff]   ;;  %v3514_v4 = vld [vmem:[#allocation11 + $0xe8] sm:$0xff]   ;;  %s3747_s2 = scalar_lea.vmem %s4943_s1, 2048  ;;  %p5158_p10 = scmp.ne.s32.totalorder %s5113_s26, 0 }
 0x25f   : > { %v3507_v61 = vld [vmem:[#allocation11 + $0x18] sm:$0xff]   ;;  %v3511_v1 = vld [vmem:[#allocation11 + $0x20] sm:$0xff]   ;;  %v3515_v5 = vld [vmem:[#allocation11 + $0x28] sm:$0xff]   ;;  %p3748_p5 = scmp.ne.s32.totalorder %s4943_s1, %s3747_s2  ;;  %s3923_s3 = smov [#allocation14]  }
 0x260   : > { %2909 = vmatpush3.bf16.msra.mxu1 %v3499_v53  ;;  %v3508_v62 = vld [vmem:[#allocation11 + $0x98] sm:$0xff]   ;;  %v3512_v2 = vld [vmem:[#allocation11 + $0xa0] sm:$0xff]   ;;  %v3516_v6 = vld [vmem:[#allocation11 + $0xa8] sm:$0xff]   ;;  %s3751_s25 = sshll.u32 %s3923_s3, 4  ;;  %s3752_s25 = int_to_ptr.vmem [resolvable:$false] %s3751_s25 }
 0x261   : > { %2973 = vmatpush3.bf16.msra.mxu0 %v3500_v54  ;;  %2910 = vmatprep.subr.bf16.mxu1 %v3501_v55  ;;  %v3517_v7 = vld [vmem:[#allocation11 + $0x70] sm:$0xff]   ;;  %v3521_v15 = vld [vmem:[#allocation11 + $0x78] sm:$0xff]   ;;  %vm4553_vm4 = vmand %vm913_vm0, %vm914_vm2  ;;  %s2887_s6 = sshll.u32 %s5155_s29, 4  ;;  %p3749_p8 = pnand %p3748_p5, %p5158_p10 }
 0x262   : > { %2974 = vmatprep.subr.bf16.mxu0 %v3502_v56  ;;  %v3518_v8 = vld [vmem:[#allocation11 + $0xf0] sm:$0xff]   ;;  %v3522_v16 = vld [vmem:[#allocation11 + $0xf8] sm:$0xff]   ;;  %v3525_v38 = vld [vmem:[#allocation11 + $0x140] sm:$0xff]   ;;  %s2876_s20 = sshll.u32 %s5156_s10, 5  ;;  %s3753_s30 = scalar_lea.vmem %s3752_s25, 4096 }
 0x263   : > { %v3519_v9 = vld [vmem:[#allocation11 + $0x30] sm:$0xff]   ;;  %v3523_v21 = vld [vmem:[#allocation11 + $0x38] sm:$0xff]   ;;  %vm4558_vm5 = vmand %vm948_vm1, %vm949_vm3  ;;  %s2575_s21 = sadd.s32 %s2887_s6, %s2876_s20  ;;  %p3750_p2 = pneg %p3749_p8 }
 0x264   : > { %2911 = vmatpush3.bf16.msra.mxu1 %v3503_v57  ;;  %v3520_v10 = vld [vmem:[#allocation11 + $0xb0] sm:$0xff]   ;;  %v3524_v22 = vld [vmem:[#allocation11 + $0xb8] sm:$0xff]   ;;  %v4562_v47 = vld [vmem:[#allocation2 + $0x10] sm:$0xff]  ;;  %s2877_s13 = sshll.u32 %s2575_s21, 7  ;;  %p3754_p9 = scmp.lt.s32.totalorder %s4943_s1, %s3752_s25 }
 0x265   : > { %2975 = vmatpush3.bf16.msra.mxu0 %v3504_v58  ;;  %2912 = vmatprep.subr.bf16.mxu1 %v3505_v59  ;;  %v841_v27 = vld [vmem:[#allocation2] sm:$0xff]  ;;  %v4548_v28 = vld [vmem:[#allocation2 + $0x8] sm:$0xff]  ;;  %v3526_v50 = vld [vmem:[#allocation11 + $0x100] sm:$0xff]   ;;  %v976_v51 = vshrl.u32 %v4562_v47, 16  ;;  %v979_v52 = vshll.u32 %v4562_v47, 16  ;;  %s4941_s23 = scalar_lea.hbm %s5157_s7, %s2877_s13  ;;  %p3755_p7 = scmp.lt.s32.totalorder %s3753_s30, %s3747_s2 }
 0x266   : > { %2976 = vmatprep.subr.bf16.mxu0 %v3506_v60  ;;  %v850_v33 = vshrl.u32 %v841_v27, 16  ;;  %v853_v34 = vshll.u32 %v841_v27, 16  ;;  %1794 = vmatprep.mubr.bf16.mxu1 %v841_v27  ;;  %v969_v35 = vshrl.u32 %v4548_v28, 16  ;;  %v972_v36 = vshll.u32 %v4548_v28, 16  ;;  %v3527_v54 = vld [vmem:[#allocation11 + $0x148] sm:$0xff]   ;;  %v4594_v27 = vld [vmem:[#allocation2 + $0x28] sm:$0xff] }
 0x267   : > { %v4566_v55 = vld [vmem:[#allocation2 + $0x18] sm:$0xff]  ;;  %v978_v59 = vrot.slane %v976_v51, 7  ;;  %v3569_v46 = vld [vmem:[#allocation12 + $0x20] sm:$0xff]   ;;  %p3756_p6 = por %p3755_p7, %p3754_p9 }
 0x268   : > { %2913 = vmatpush3.bf16.msra.mxu1 %v3507_v61  ;;  %v971_v39 = vrot.slane %v969_v35, 7  ;;  %v852_v41 = vrot.slane %v850_v33, 7  ;;  %v924_v45 = vrot.slane %v853_v34, 1  ;;  %v926_v43 = vrot.slane %v972_v36, 1 }
 0x269   : > { %2977 = vmatpush3.bf16.msra.mxu0 %v3508_v62  ;;  %2914 = vmatprep.subr.bf16.mxu1 %v3509_v63  ;;  %v983_v60 = vshrl.u32 %v4566_v55, 16  ;;  %v986_v61 = vshll.u32 %v4566_v55, 16  ;;  %v981_v62 = vor.u32 %v979_v52, %v978_v59  ;;  %v3528_v63 = vld [vmem:[#allocation11 + $0x108] sm:$0xff]   ;;  %p3757_p13 = pnand %p3756_p6, %p3750_p2 }
 0x26a   : > { %2978 = vmatprep.subr.bf16.mxu0 %v3510_v0  ;;  %v974_v44 = vor.u32 %v972_v36, %v971_v39  ;;  %v855_v48 = vor.u32 %v853_v34, %v852_v41  ;;  %v925_v49 = vor.u32 %v924_v45, %v850_v33  ;;  %v927_v53 = vor.u32 %v969_v35, %v926_v43  ;;  %v3532_v34 = vld [vmem:[#allocation11 + $0x118] sm:$0xff]   ;;  %v3535_v35 = vld [vmem:[#allocation11 + $0x160] sm:$0xff]   ;;  %v3537_v36 = vld [vmem:[#allocation11 + $0x1c8] sm:$0xff]  }
 0x26b   : > { %v985_v0 = vrot.slane %v983_v60, 7  ;;  %v997_v39 = vshrl.u32 %v4594_v27, 16  ;;  %v3538_v41 = vld [vmem:[#allocation11 + $0x188] sm:$0xff]   ;;  %v930_v45 = vrot.slane %v986_v61, 1  ;;  %v4600_v43 = vld [vmem:[#allocation2 + $0x30] sm:$0xff] }
 0x26c   : > { %2915 = vmatpush3.bf16.msra.mxu1 %v3511_v1  ;;  %v1032_v56 = vsel %vm4553_vm4, 0, %v974_v44  ;;  %v916_v57 = vsel %vm4553_vm4, 0, %v855_v48  ;;  %v951_v58 = vsel %vm4558_vm5, %v925_v49, 0  ;;  %v3529_v1 = vld [vmem:[#allocation11 + $0x150] sm:$0xff]   ;;  %v1000_v48 = vshll.u32 %v4594_v27, 16  ;;  %v3536_v49 = vld [vmem:[#allocation11 + $0x120] sm:$0xff]  }
 0x26d   : > { %2979 = vmatpush3.bf16.msra.mxu0 %v3512_v2  ;;  %2916 = vmatprep.subr.bf16.mxu1 %v3513_v3  ;;  %v4577_v2 = vld [vmem:[#allocation2 + $0x20] sm:$0xff]  ;;  %v4581_v3 = vsel %vm4553_vm4, 0, %v981_v62  ;;  %v3543_v62 = vld [vmem:[#allocation11 + $0x1d8] sm:$0xff]  }
 0x26e   : > { %2980 = vmatprep.subr.bf16.mxu0 %v3514_v4  ;;  %1891 = vmatprep.mubr.bf16.mxu0 %v1032_v56  ;;  %v4585_v4 = vsel %vm4558_vm5, %v927_v53, 0  ;;  %v3539_v53 = vld [vmem:[#allocation11 + $0x168] sm:$0xff]  }
 0x270   : > { %2917 = vmatpush3.bf16.msra.mxu1 %v3515_v5  ;;  %v990_v5 = vshrl.u32 %v4577_v2, 16 }
 0x271   : > { %2981 = vmatpush3.bf16.msra.mxu0 %v3516_v6  ;;  %2918 = vmatprep.subr.bf16.mxu1 %v3517_v7  ;;  %v988_v6 = vor.u32 %v986_v61, %v985_v0  ;;  %v928_v7 = vrot.slane %v979_v52, 1  ;;  %v999_v52 = vrot.slane %v997_v39, 7  ;;  %v1007_v61 = vshll.u32 %v4600_v43, 16  ;;  %v3540_v0 = vld [vmem:[#allocation11 + $0x128] sm:$0xff]  }
 0x272   : > { %2982 = vmatprep.subr.bf16.mxu0 %v3518_v8  ;;  %v3530_v8 = vld [vmem:[#allocation11 + $0x110] sm:$0xff]  }
 0x273   : > { %v929_v33 = vor.u32 %v976_v51, %v928_v7 }
 0x274   : > { %2919 = vmatpush3.bf16.msra.mxu1 %v3519_v9  ;;  %v993_v9 = vshll.u32 %v4577_v2, 16 }
 0x275   : > { %2983 = vmatpush3.bf16.msra.mxu0 %v3520_v10  ;;  %2920 = vmatprep.subr.bf16.mxu1 %v3521_v15  ;;  %v3533_v10 = vld [vmem:[#allocation11 + $0x1c0] sm:$0xff]   ;;  %v992_v15 = vrot.slane %v990_v5, 7  ;;  %v4604_v44 = vsel %vm4558_vm5, %v929_v33, 0  ;;  %v3549_v33 = vld [vmem:[#allocation11 + $0x1e8] sm:$0xff]  }
 0x276   : > { %2984 = vmatprep.subr.bf16.mxu0 %v3522_v16  ;;  %v3531_v16 = vld [vmem:[#allocation11 + $0x158] sm:$0xff]  }
 0x278   : > { %2921 = vmatpush3.bf16.msra.mxu1 %v3523_v21  ;;  %v4592_v21 = vsel %vm4553_vm4, 0, %v988_v6  ;;  %v3545_v6 = vld [vmem:[#allocation11 + $0x170] sm:$0xff]  }
 0x279   : > { %2985 = vmatpush3.bf16.msra.mxu0 %v3524_v22  ;;  %3034 = vmatprep.subr.bf16.mxu1 %v3525_v38  ;;  %v3534_v22 = vld [vmem:[#allocation11 + $0x180] sm:$0xff]   ;;  %v995_v38 = vor.u32 %v993_v9, %v992_v15 }
 0x27a   : > { %3098 = vmatprep.subr.bf16.mxu0 %v3533_v10  ;;  %v3547_v10 = vld [vmem:[#allocation11 + $0x1e0] sm:$0xff]  }
 0x27b   : > { %1795 = vmatmul.mubr.bf16.vlgmr.msra.gmra.mrb[0].mxu1 %v916_v57  ;;  %v4610_v51 = vsel %vm4553_vm4, 0, %v995_v38  ;;  %v3542_v57 = vld [vmem:[#allocation11 + $0x190] sm:$0xff]   ;;  %v3551_v38 = vld [vmem:[#allocation11 + $0x178] sm:$0xff]  }
 0x27c   : > { %1892 = vmatmul.mubr.bf16.vlgmr.msra.gmra.mrb[20].mxu0 %v951_v58  ;;  %3035 = vmatpush3.bf16.msra.mxu1 %v3526_v50  ;;  %v1004_v50 = vshrl.u32 %v4600_v43, 16  ;;  %v931_v58 = vor.u32 %v983_v60, %v930_v45  ;;  %v3552_v45 = vld [vmem:[#allocation11 + $0x138] sm:$0xff]  }
 0x27d   : > { %1802 = vmatprep.mubr.bf16.mxu1 %v4548_v28  ;;  %3036 = vmatprep.subr.bf16.mxu1 %v3527_v54  ;;  %v3541_v54 = vld [vmem:[#allocation11 + $0x1d0] sm:$0xff]  }
 0x27e   : > { %1899 = vmatprep.mubr.bf16.mxu0 %v4581_v3  ;;  %3099 = vmatpush3.bf16.msra.mxu0 %v3534_v22  ;;  %v1006_v59 = vrot.slane %v1004_v50, 7  ;;  %v4623_v60 = vsel %vm4558_vm5, %v931_v58, 0  ;;  %v3548_v22 = vld [vmem:[#allocation11 + $0x1a0] sm:$0xff]  }
 0x27f   : > { %3100 = vmatprep.subr.bf16.mxu0 %v3537_v36  ;;  %v3550_v36 = vld [vmem:[#allocation11 + $0x1a8] sm:$0xff]  }
 0x280   : > { %3037 = vmatpush3.bf16.msra.mxu1 %v3528_v63  ;;  %v1002_v63 = vor.u32 %v1000_v48, %v999_v52  ;;  %v3553_v52 = vld [vmem:[#allocation11 + $0x1f0] sm:$0xff]  }
 0x281   : > { %3038 = vmatprep.subr.bf16.mxu1 %v3529_v1  ;;  %v3544_v1 = vld [vmem:[#allocation11 + $0x198] sm:$0xff]  }
 0x282   : > { %3101 = vmatpush3.bf16.msra.mxu0 %v3538_v41  ;;  %v4629_v15 = vsel %vm4553_vm4, 0, %v1002_v63 }
 0x283   : > { %1803 = vmatmul.mubr.bf16.gmra.mrb[4].mxu1 %v1032_v56  ;;  %v932_v56 = vrot.slane %v993_v9, 1  ;;  %3102 = vmatprep.subr.bf16.mxu0 %v3541_v54  ;;  %v4625_v9 = vld [vmem:[#allocation2 + $0x38] sm:$0xff]  ;;  %v3554_v54 = vld [vmem:[#allocation11 + $0x1b0] sm:$0xff]  }
 0x284   : > { %1900 = vmatmul.mubr.bf16.gmra.mrb[24].mxu0 %v4585_v4  ;;  %1810 = vmatprep.mubr.bf16.mxu1 %v4562_v47  ;;  %v1011_v41 = vshrl.u32 %v4625_v9, 16 }
 0x285   : > { %1907 = vmatprep.mubr.bf16.mxu0 %v4592_v21  ;;  %3039 = vmatpush3.bf16.msra.mxu1 %v3530_v8  ;;  %v933_v7 = vor.u32 %v990_v5, %v932_v56  ;;  %v1009_v8 = vor.u32 %v1007_v61, %v1006_v59  ;;  %v1050_v59 = vrot.slane %v1007_v61, 1 }
 0x286   : > { %3040 = vmatprep.subr.bf16.mxu1 %v3531_v16  ;;  %3103 = vmatpush3.bf16.msra.mxu0 %v3542_v57  ;;  %v3546_v16 = vld [vmem:[#allocation11 + $0x130] sm:$0xff]   ;;  %v1013_v56 = vrot.slane %v1011_v41, 7  ;;  %v3557_v57 = vld [vmem:[#allocation11 + $0x200] sm:$0xff]  }
 0x287   : > { %3104 = vmatprep.subr.bf16.mxu0 %v3543_v62  ;;  %v4634_v5 = vsel %vm4558_vm5, %v933_v7, 0 }
 0x289   : > { %3041 = vmatpush3.bf16.msra.mxu1 %v3532_v34  ;;  %v4640_v34 = vsel %vm4553_vm4, 0, %v1009_v8 }
 0x28a   : > { %3042 = vmatprep.subr.bf16.mxu1 %v3535_v35  ;;  %3105 = vmatpush3.bf16.msra.mxu0 %v3544_v1  ;;  %v934_v35 = vrot.slane %v1000_v48, 1  ;;  %v3555_v48 = vld [vmem:[#allocation11 + $0x1f8] sm:$0xff]   ;;  %v1051_v1 = vor.u32 %v1050_v59, %v1004_v50 }
 0x28b   : > { %1811 = vmatmul.mubr.bf16.gmra.mrb[8].mxu1 %v4581_v3  ;;  %3106 = vmatprep.subr.bf16.mxu0 %v3547_v10 }
 0x28c   : > { %1908 = vmatmul.mubr.bf16.gmra.mrb[28].mxu0 %v4604_v44  ;;  %1818 = vmatprep.mubr.bf16.mxu1 %v4566_v55  ;;  %v935_v58 = vor.u32 %v997_v39, %v934_v35  ;;  %v4663_v39 = vsel %vm4558_vm5, %v1051_v1, 0 }
 0x28d   : > { %1915 = vmatprep.mubr.bf16.mxu0 %v4610_v51  ;;  %3043 = vmatpush3.bf16.msra.mxu1 %v3536_v49  ;;  %v1014_v49 = vshll.u32 %v4625_v9, 16 }
 0x28e   : > { %3044 = vmatprep.subr.bf16.mxu1 %v3539_v53  ;;  %3107 = vmatpush3.bf16.msra.mxu0 %v3548_v22  ;;  %v4645_v53 = vld [vmem:[#allocation2 + $0x40] sm:$0xff]  ;;  %v4659_v8 = vsel %vm4558_vm5, %v935_v58, 0  ;;  %v3570_v58 = vld [vmem:[#allocation12 + $0x28] sm:$0xff]  }
 0x28f   : > { %3108 = vmatprep.subr.bf16.mxu0 %v3549_v33  ;;  %v1018_v62 = vshrl.u32 %v4645_v53, 16  ;;  %v1016_v63 = vor.u32 %v1014_v49, %v1013_v56  ;;  %v1021_v7 = vshll.u32 %v4645_v53, 16 }
 0x291   : > { %3045 = vmatpush3.bf16.msra.mxu1 %v3540_v0  ;;  %v3556_v0 = vld [vmem:[#allocation11 + $0x1b8] sm:$0xff]   ;;  %v1054_v10 = vrot.slane %v1021_v7, 1  ;;  %v1020_v22 = vrot.slane %v1018_v62, 7 }
 0x292   : > { %3046 = vmatprep.subr.bf16.mxu1 %v3545_v6  ;;  %3109 = vmatpush3.bf16.msra.mxu0 %v3550_v36  ;;  %v1052_v6 = vrot.slane %v1014_v49, 1  ;;  %v3560_v49 = vld [vmem:[#allocation11 + $0x218] sm:$0xff]  }
 0x293   : > { %1819 = vmatmul.mubr.bf16.gmra.mrb[12].mxu1 %v4592_v21  ;;  %3110 = vmatprep.subr.bf16.mxu0 %v3553_v52  ;;  %v1055_v33 = vor.u32 %v1054_v10, %v1018_v62  ;;  %v1023_v36 = vor.u32 %v1021_v7, %v1020_v22 }
 0x294   : > { %1916 = vmatmul.mubr.bf16.gmra.mrb[32].mxu0 %v4623_v60  ;;  %1826 = vmatprep.mubr.bf16.mxu1 %v4577_v2  ;;  %v1053_v61 = vor.u32 %v1052_v6, %v1011_v41  ;;  %v3558_v41 = vld [vmem:[#allocation11 + $0x208] sm:$0xff]  }
 0x295   : > { %1923 = vmatprep.mubr.bf16.mxu0 %v4629_v15  ;;  %3047 = vmatpush3.bf16.msra.mxu1 %v3546_v16  ;;  %v4667_v16 = vsel %vm4553_vm4, 0, %v1016_v63  ;;  %v4679_v35 = vsel %vm4558_vm5, %v1055_v33, 0 }
 0x296   : > { %3048 = vmatprep.subr.bf16.mxu1 %v3551_v38  ;;  %3111 = vmatpush3.bf16.msra.mxu0 %v3554_v54  ;;  %v4671_v50 = vsel %vm4558_vm5, %v1053_v61, 0  ;;  %v1039_v38 = vsel %vm4553_vm4, 0, %v1023_v36 }
 0x297   : > { %3112 = vmatprep.subr.bf16.mxu0 %v3555_v48 }
 0x299   : > { %3049 = vmatpush3.bf16.msra.mxu1 %v3552_v45  ;;  %v3559_v45 = vld [vmem:[#allocation11 + $0x210] sm:$0xff]  }
 0x29a   : > { %3230 = vmatprep.subr.bf16.mxu1 %v3557_v57  ;;  %3113 = vmatpush3.bf16.msra.mxu0 %v3556_v0 }
 0x29b   : > { %1827 = vmatmul.mubr.bf16.gmra.mrb[16].mxu1 %v4610_v51 }
 0x29c   : > { %1924 = vmatmul.mubr.bf16.gmra.mrb[36].mxu0 %v4634_v5  ;;  %1834 = vmatprep.mubr.bf16.mxu1 %v4594_v27 }
 0x29d   : > { %1931 = vmatprep.mubr.bf16.mxu0 %v4640_v34 }
 0x2a3   : > { %1835 = vmatmul.mubr.bf16.gmra.mrb[20].mxu1 %v4629_v15 }
 0x2a4   : > { %1932 = vmatmul.mubr.bf16.gmra.mrb[40].mxu0 %v4659_v8  ;;  %1842 = vmatprep.mubr.bf16.mxu1 %v4600_v43 }
 0x2a5   : > { %1939 = vmatprep.mubr.bf16.mxu0 %v4667_v16 }
 0x2ab   : > { %1843 = vmatmul.mubr.bf16.gmra.mrb[24].mxu1 %v4640_v34 }
 0x2ac   : > { %1940 = vmatmul.mubr.bf16.gmra.mrb[44].mxu0 %v4663_v39  ;;  %1850 = vmatprep.mubr.bf16.mxu1 %v4625_v9 }
 0x2ad   : > { %1947 = vmatprep.mubr.bf16.mxu0 %v1039_v38 }
 0x2b3   : > { %1851 = vmatmul.mubr.bf16.gmra.mrb[28].mxu1 %v4667_v16 }
 0x2b4   : > { %1948 = vmatmul.mubr.bf16.gmra.mrb[48].mxu0 %v4671_v50  ;;  %1988 = vmatprep.mubr.bf16.mxu1 %v4585_v4  ;;  %v3564_v4 = vld [vmem:[#allocation11 + $0x238] sm:$0xff]  }
 0x2b5   : > { %2085 = vmatprep.mubr.bf16.mxu0 %v4562_v47 }
 0x2bb   : > { %1989 = vmatmul.mubr.bf16.vlgmr.msra.gmra.mrb[32].mxu1 %v4548_v28  ;;  %v3561_v28 = vld [vmem:[#allocation11 + $0x220] sm:$0xff]  }
 0x2bc   : > { %3231 = vmatpush3.bf16.msra.mxu1 %v3557_v57  ;;  %2086 = vmatmul.mubr.bf16.vlgmr.msra.gmra.mrb[52].mxu0 %v4581_v3  ;;  %v3562_v3 = vld [vmem:[#allocation11 + $0x228] sm:$0xff]  }
 0x2bd   : > { %1996 = vmatprep.mubr.bf16.mxu1 %v4604_v44  ;;  %3232 = vmatprep.subr.bf16.mxu1 %v3558_v41 }
 0x2be   : > { %2093 = vmatprep.mubr.bf16.mxu0 %v4566_v55 }
 0x2c0   : > { %3233 = vmatpush3.bf16.msra.mxu1 %v3558_v41 }
 0x2c1   : > { %3234 = vmatprep.subr.bf16.mxu1 %v3559_v45 }
 0x2c3   : > { %1997 = vmatmul.mubr.bf16.gmra.mrb[36].mxu1 %v4562_v47  ;;  %v3563_v47 = vld [vmem:[#allocation11 + $0x230] sm:$0xff]  }
 0x2c4   : > { %2094 = vmatmul.mubr.bf16.gmra.mrb[56].mxu0 %v4592_v21  ;;  %2004 = vmatprep.mubr.bf16.mxu1 %v4623_v60 }
 0x2c5   : > { %2101 = vmatprep.mubr.bf16.mxu0 %v4577_v2  ;;  %3235 = vmatpush3.bf16.msra.mxu1 %v3559_v45 }
 0x2c6   : > { %3236 = vmatprep.subr.bf16.mxu1 %v3560_v49 }
 0x2c9   : > { %3237 = vmatpush3.bf16.msra.mxu1 %v3560_v49 }
 0x2ca   : > { %3238 = vmatprep.subr.bf16.mxu1 %v3561_v28 }
 0x2cb   : > { %2005 = vmatmul.mubr.bf16.gmra.mrb[40].mxu1 %v4566_v55  ;;  %v1080_v55 = vld [vmem:[#allocation2 + $0x48] sm:$0xff] }
 0x2cc   : > { %2102 = vmatmul.mubr.bf16.gmra.mrb[60].mxu0 %v4610_v51  ;;  %2012 = vmatprep.mubr.bf16.mxu1 %v4634_v5  ;;  %v1134_v21 = vshll.u32 %v1080_v55, 16 }
 0x2cd   : > { %2109 = vmatprep.mubr.bf16.mxu0 %v4594_v27  ;;  %3239 = vmatpush3.bf16.msra.mxu1 %v3561_v28 }
 0x2ce   : > { %3240 = vmatprep.subr.bf16.mxu1 %v3562_v3 }
 0x2d1   : > { %3241 = vmatpush3.bf16.msra.mxu1 %v3562_v3 }
 0x2d2   : > { %3242 = vmatprep.subr.bf16.mxu1 %v3563_v47 }
 0x2d3   : > { %2013 = vmatmul.mubr.bf16.gmra.mrb[44].mxu1 %v4577_v2  ;;  %v1131_v2 = vshrl.u32 %v1080_v55, 16 }
 0x2d4   : > { %2110 = vmatmul.mubr.bf16.gmra.mrb[64].mxu0 %v4629_v15  ;;  %2020 = vmatprep.mubr.bf16.mxu1 %v4659_v8 }
 0x2d5   : > { %2117 = vmatprep.mubr.bf16.mxu0 %v4600_v43  ;;  %3243 = vmatpush3.bf16.msra.mxu1 %v3563_v47  ;;  %v1133_v51 = vrot.slane %v1131_v2, 7 }
 0x2d6   : > { %3244 = vmatprep.subr.bf16.mxu1 %v3564_v4 }
 0x2d9   : > { %3245 = vmatpush3.bf16.msra.mxu1 %v3564_v4 }
 0x2db   : > { %2021 = vmatmul.mubr.bf16.gmra.mrb[48].mxu1 %v4594_v27  ;;  %v1136_v27 = vor.u32 %v1134_v21, %v1133_v51 }
 0x2dc   : > { %2118 = vmatmul.mubr.bf16.gmra.mrb[68].mxu0 %v4640_v34  ;;  %2028 = vmatprep.mubr.bf16.mxu1 %v4663_v39  ;;  %v3565_v34 = vld [vmem:[#allocation12] sm:$0xff]  }
 0x2dd   : > { %2125 = vmatprep.mubr.bf16.mxu0 %v4625_v9  ;;  %v1152_v15 = vsel %vm4553_vm4, 0, %v1136_v27  ;;  %3262 = vmatprep.subr.bf16.mxu0 %v3565_v34 }
 0x2de   : > { %3294 = vmatprep.subr.bf16.mxu1 %v3565_v34  ;;  %3263 = vmatpush3.bf16.msra.mxu0 %v3565_v34 }
 0x2e3   : > { %2029 = vmatmul.mubr.bf16.gmra.mrb[52].mxu1 %v4600_v43  ;;  %v1167_v43 = vrot.slane %v1134_v21, 1 }
 0x2e4   : > { %2126 = vmatmul.mubr.bf16.gmra.mrb[72].mxu0 %v4667_v16  ;;  %2036 = vmatprep.mubr.bf16.mxu1 %v4671_v50 }
 0x2e5   : > { %2133 = vmatprep.mubr.bf16.mxu0 %v4645_v53  ;;  %v1168_v37 = vor.u32 %v1167_v43, %v1131_v2 }
 0x2eb   : > { %2037 = vmatmul.mubr.bf16.gmra.mrb[56].mxu1 %v4625_v9  ;;  %v1184_v9 = vsel %vm4558_vm5, %v1168_v37, 0 }
 0x2ec   : > { %2134 = vmatmul.mubr.bf16.gmra.mrb[76].mxu0 %v1039_v38  ;;  %2044 = vmatprep.mubr.bf16.mxu1 %v4679_v35 }
 0x2ed   : > { %2141 = vmatprep.mubr.bf16.mxu0 %v1080_v55 }
 0x2f3   : > { %2045 = vmatmul.mubr.bf16.gmra.mrb[60].mxu1 %v4645_v53 }
 0x2f4   : > { %2142 = vmatmul.mubr.bf16.gmra.mrb[80].mxu0 %v1152_v15  ;;  %3246 = vmatprep.mubr.bf16.mxu1 %v4604_v44  ;;  %v3566_v44 = vld [vmem:[#allocation12 + $0x8] sm:$0xff]  }
 0x2f5   : > { %3264 = vmatprep.subr.bf16.mxu0 %v3566_v44 }
 0x2f6   : > { %3265 = vmatpush3.bf16.msra.mxu0 %v3566_v44 }
 0x2fb   : > { %3247 = vmatmul.mubr.bf16.vlgmr.msra.gmra.mrb[64].mxu1 %v4623_v60  ;;  %v3567_v60 = vld [vmem:[#allocation12 + $0x10] sm:$0xff]  }
 0x2fc   : > { %3250 = vmatprep.mubr.bf16.mxu1 %v4634_v5  ;;  %3302 = vmatpush3.bf16.msra.mxu1 %v3565_v34  ;;  %v3568_v5 = vld [vmem:[#allocation12 + $0x18] sm:$0xff]  }
 0x2fd   : > { %3295 = vmatprep.subr.bf16.mxu1 %v3566_v44  ;;  %3266 = vmatprep.subr.bf16.mxu0 %v3567_v60 }
 0x2fe   : > { %3267 = vmatpush3.bf16.msra.mxu0 %v3567_v60 }
 0x2ff   : > { %3268 = vmatprep.subr.bf16.mxu0 %v3568_v5 }
 0x300   : > { %3303 = vmatpush3.bf16.msra.mxu1 %v3566_v44 }
 0x301   : > { %3296 = vmatprep.subr.bf16.mxu1 %v3567_v60 }
 0x302   : > { %3269 = vmatpush3.bf16.msra.mxu0 %v3568_v5 }
 0x303   : > { %3251 = vmatmul.mubr.bf16.gmra.mrb[68].mxu1 %v4659_v8  ;;  %3270 = vmatprep.subr.bf16.mxu0 %v3569_v46  ;;  %v3571_v8 = vld [vmem:[#allocation12 + $0x30] sm:$0xff]  }
 0x304   : > { %3254 = vmatprep.mubr.bf16.mxu1 %v4663_v39  ;;  %3304 = vmatpush3.bf16.msra.mxu1 %v3567_v60 }
 0x305   : > { %3297 = vmatprep.subr.bf16.mxu1 %v3568_v5 }
 0x306   : > { %3271 = vmatpush3.bf16.msra.mxu0 %v3569_v46 }
 0x307   : > { %3272 = vmatprep.subr.bf16.mxu0 %v3570_v58 }
 0x308   : > { %3305 = vmatpush3.bf16.msra.mxu1 %v3568_v5 }
 0x309   : > { %3298 = vmatprep.subr.bf16.mxu1 %v3569_v46 }
 0x30a   : > { %3273 = vmatpush3.bf16.msra.mxu0 %v3570_v58 }
 0x30b   : > { %3255 = vmatmul.mubr.bf16.gmra.mrb[72].mxu1 %v4671_v50  ;;  %3274 = vmatprep.subr.bf16.mxu0 %v3571_v8 }
 0x30c   : > { %3258 = vmatprep.mubr.bf16.mxu1 %v4679_v35  ;;  %3306 = vmatpush3.bf16.msra.mxu1 %v3569_v46  ;;  %v3572_v35 = vld [vmem:[#allocation12 + $0x38] sm:$0xff]  }
 0x30d   : > { %3299 = vmatprep.subr.bf16.mxu1 %v3570_v58 }
 0x30e   : > { %3275 = vmatpush3.bf16.msra.mxu0 %v3571_v8 }
 0x30f   : > { %3276 = vmatprep.subr.bf16.mxu0 %v3572_v35 }
 0x310   : > { %3307 = vmatpush3.bf16.msra.mxu1 %v3570_v58 }
 0x311   : > { %3300 = vmatprep.subr.bf16.mxu1 %v3571_v8 }
 0x312   : > { %3277 = vmatpush3.bf16.msra.mxu0 %v3572_v35 }
 0x313   : > { %3259 = vmatmul.mubr.bf16.gmra.mrb[76].mxu1 %v1184_v9 }
 0x314   : > { %3308 = vmatpush3.bf16.msra.mxu1 %v3571_v8 }
 0x315   : > { %3301 = vmatprep.subr.bf16.mxu1 %v3572_v35 }
 0x318   : > { %3309 = vmatpush3.bf16.msra.mxu1 %v3572_v35 }
 0x34e   : > { %v2922_v52 = vpop.f32.mrb[0].mxu1 }
 0x34f   : > { %v2986_v53 = vpop.f32.mrb[20].mxu0  ;;  %v2923_v54 = vpop.f32.mrb[1].mxu1 }
 0x350   : > { %v2924_v56 = vadd.f32 %v2923_v54, %v2922_v52  ;;  %v2987_v48 = vpop.f32.mrb[21].mxu0  ;;  %v2925_v57 = vpop.f32.mrb[2].mxu1 }
 0x351   : > { %v2988_v59 = vadd.f32 %v2987_v48, %v2986_v53  ;;  %v2989_v62 = vpop.f32.mrb[22].mxu0  ;;  %v2926_v63 = vpop.f32.mrb[3].mxu1 }
 0x352   : > { %v2927_v0 = vadd.f32 %v2926_v63, %v2925_v57  ;;  %v2990_v1 = vpop.f32.mrb[23].mxu0 }
 0x353   : > { %v4728_v6 = vadd.f32 %v2988_v59, %v2924_v56  ;;  %v2991_v7 = vadd.f32 %v2990_v1, %v2989_v62 }
 0x355   : > { %v4730_v39 = vadd.f32 %v2991_v7, %v2927_v0 }
 0x356   : > { %v2928_v61 = vpop.f32.mrb[4].mxu1 }
 0x357   : > { %v2992_v10 = vpop.f32.mrb[24].mxu0  ;;  %v2929_v16 = vpop.f32.mrb[5].mxu1 }
 0x358   : > { %v2930_v22 = vadd.f32 %v2929_v16, %v2928_v61  ;;  %v2993_v50 = vpop.f32.mrb[25].mxu0  ;;  %v2931_v33 = vpop.f32.mrb[6].mxu1 }
 0x359   : > { %v2994_v36 = vadd.f32 %v2993_v50, %v2992_v10  ;;  %v2995_v38 = vpop.f32.mrb[26].mxu0  ;;  %v2932_v41 = vpop.f32.mrb[7].mxu1 }
 0x35a   : > { %v2933_v45 = vadd.f32 %v2932_v41, %v2931_v33  ;;  %v2996_v49 = vpop.f32.mrb[27].mxu0 }
 0x35b   : > { %v4732_v28 = vadd.f32 %v2994_v36, %v2930_v22  ;;  %v2997_v3 = vadd.f32 %v2996_v49, %v2995_v38 }
 0x35d   : > { %v4734_v47 = vadd.f32 %v2997_v3, %v2933_v45 }
 0x35e   : > { %v2934_v4 = vpop.f32.mrb[8].mxu1 }
 0x35f   : > { %v2998_v55 = vpop.f32.mrb[28].mxu0  ;;  %v2935_v2 = vpop.f32.mrb[9].mxu1 }
 0x360   : > { %v2936_v21 = vadd.f32 %v2935_v2, %v2934_v4  ;;  %v2999_v51 = vpop.f32.mrb[29].mxu0  ;;  %v2937_v27 = vpop.f32.mrb[10].mxu1 }
 0x361   : > { %v3000_v15 = vadd.f32 %v2999_v51, %v2998_v55  ;;  %v3001_v43 = vpop.f32.mrb[30].mxu0  ;;  %v2938_v37 = vpop.f32.mrb[11].mxu1 }
 0x362   : > { %v2939_v9 = vadd.f32 %v2938_v37, %v2937_v27  ;;  %v3002_v34 = vpop.f32.mrb[31].mxu0 }
 0x363   : > { %v4736_v44 = vadd.f32 %v3000_v15, %v2936_v21  ;;  %v3003_v60 = vadd.f32 %v3002_v34, %v3001_v43 }
 0x365   : > { %v4738_v5 = vadd.f32 %v3003_v60, %v2939_v9 }
 0x366   : > { %v2940_v46 = vpop.f32.mrb[12].mxu1 }
 0x367   : > { %v3004_v52 = vpop.f32.mrb[32].mxu0  ;;  %v2941_v53 = vpop.f32.mrb[13].mxu1 }
 0x368   : > { %v2942_v54 = vadd.f32 %v2941_v53, %v2940_v46  ;;  %v3005_v56 = vpop.f32.mrb[33].mxu0  ;;  %v2943_v48 = vpop.f32.mrb[14].mxu1 }
 0x369   : > { %v3006_v57 = vadd.f32 %v3005_v56, %v3004_v52  ;;  %v3007_v58 = vpop.f32.mrb[34].mxu0  ;;  %v2944_v59 = vpop.f32.mrb[15].mxu1 }
 0x36a   : > { %v2945_v62 = vadd.f32 %v2944_v59, %v2943_v48  ;;  %v3008_v63 = vpop.f32.mrb[35].mxu0 }
 0x36b   : > { %v4740_v0 = vadd.f32 %v3006_v57, %v2942_v54  ;;  %v3009_v1 = vadd.f32 %v3008_v63, %v3007_v58 }
 0x36d   : > { %v4742_v7 = vadd.f32 %v3009_v1, %v2945_v62 }
 0x36e   : > { %v2946_v8 = vpop.f32.mrb[16].mxu1 }
 0x36f   : > { %v3010_v61 = vpop.f32.mrb[36].mxu0  ;;  %v2947_v10 = vpop.f32.mrb[17].mxu1 }
 0x370   : > { %v2948_v16 = vadd.f32 %v2947_v10, %v2946_v8  ;;  %v3011_v22 = vpop.f32.mrb[37].mxu0  ;;  %v2949_v50 = vpop.f32.mrb[18].mxu1 }
 0x371   : > { %v3012_v33 = vadd.f32 %v3011_v22, %v3010_v61  ;;  %v3013_v35 = vpop.f32.mrb[38].mxu0  ;;  %v2950_v36 = vpop.f32.mrb[19].mxu1 }
 0x372   : > { %v2951_v38 = vadd.f32 %v2950_v36, %v2949_v50  ;;  %v3014_v41 = vpop.f32.mrb[39].mxu0 }
 0x373   : > { %v4744_v45 = vadd.f32 %v3012_v33, %v2948_v16  ;;  %v3015_v49 = vadd.f32 %v3014_v41, %v3013_v35 }
 0x375   : > { %v4746_v3 = vadd.f32 %v3015_v49, %v2951_v38 }
 0x376   : > { %v2952_v4 = vpop.f32.mrb[20].mxu1 }
 0x377   : > { %v3016_v55 = vpop.f32.mrb[40].mxu0  ;;  %v2953_v2 = vpop.f32.mrb[21].mxu1 }
 0x378   : > { %v2954_v21 = vadd.f32 %v2953_v2, %v2952_v4  ;;  %v3017_v51 = vpop.f32.mrb[41].mxu0  ;;  %v2955_v27 = vpop.f32.mrb[22].mxu1 }
 0x379   : > { %v3018_v15 = vadd.f32 %v3017_v51, %v3016_v55  ;;  %v3019_v43 = vpop.f32.mrb[42].mxu0  ;;  %v2956_v37 = vpop.f32.mrb[23].mxu1 }
 0x37a   : > { %v2957_v9 = vadd.f32 %v2956_v37, %v2955_v27  ;;  %v3020_v34 = vpop.f32.mrb[43].mxu0 }
 0x37b   : > { %v4748_v60 = vadd.f32 %v3018_v15, %v2954_v21  ;;  %v3021_v46 = vadd.f32 %v3020_v34, %v3019_v43 }
 0x37d   : > { %v4750_v52 = vadd.f32 %v3021_v46, %v2957_v9 }
 0x37e   : > { %v2958_v53 = vpop.f32.mrb[24].mxu1 }
 0x37f   : > { %v3022_v54 = vpop.f32.mrb[44].mxu0  ;;  %v2959_v56 = vpop.f32.mrb[25].mxu1 }
 0x380   : > { %v2960_v48 = vadd.f32 %v2959_v56, %v2958_v53  ;;  %v3023_v57 = vpop.f32.mrb[45].mxu0  ;;  %v2961_v58 = vpop.f32.mrb[26].mxu1 }
 0x381   : > { %v3024_v59 = vadd.f32 %v3023_v57, %v3022_v54  ;;  %v3025_v62 = vpop.f32.mrb[46].mxu0  ;;  %v2962_v63 = vpop.f32.mrb[27].mxu1 }
 0x382   : > { %v2963_v1 = vadd.f32 %v2962_v63, %v2961_v58  ;;  %v3026_v8 = vpop.f32.mrb[47].mxu0 }
 0x383   : > { %v4752_v61 = vadd.f32 %v3024_v59, %v2960_v48  ;;  %v3027_v10 = vadd.f32 %v3026_v8, %v3025_v62 }
 0x385   : > { %v4754_v16 = vadd.f32 %v3027_v10, %v2963_v1 }
 0x386   : > { %v2964_v22 = vpop.f32.mrb[28].mxu1 }
 0x387   : > { %v3028_v50 = vpop.f32.mrb[48].mxu0  ;;  %v2965_v33 = vpop.f32.mrb[29].mxu1 }
 0x388   : > { %v2966_v35 = vadd.f32 %v2965_v33, %v2964_v22  ;;  %v3029_v36 = vpop.f32.mrb[49].mxu0  ;;  %v2967_v38 = vpop.f32.mrb[30].mxu1 }
 0x389   : > { %v3030_v41 = vadd.f32 %v3029_v36, %v3028_v50  ;;  %v3031_v49 = vpop.f32.mrb[50].mxu0  ;;  %v2968_v4 = vpop.f32.mrb[31].mxu1 }
 0x38a   : > { %v2969_v55 = vadd.f32 %v2968_v4, %v2967_v38  ;;  %v3032_v2 = vpop.f32.mrb[51].mxu0 }
 0x38b   : > { %v4756_v21 = vadd.f32 %v3030_v41, %v2966_v35  ;;  %v3033_v51 = vadd.f32 %v3032_v2, %v3031_v49 }
 0x38d   : > { %v4758_v27 = vadd.f32 %v3033_v51, %v2969_v55 }
 0x38e   : > { %v3050_v15 = vpop.f32.mrb[32].mxu1 }
 0x38f   : > { %v3051_v43 = vpop.f32.mrb[33].mxu1  ;;  %v3114_v37 = vpop.f32.mrb[52].mxu0 }
 0x390   : > { %v3052_v9 = vadd.f32 %v3051_v43, %v3050_v15  ;;  %v3053_v34 = vpop.f32.mrb[34].mxu1  ;;  %v3115_v46 = vpop.f32.mrb[53].mxu0 }
 0x391   : > { %v3054_v53 = vpop.f32.mrb[35].mxu1  ;;  %v3116_v54 = vadd.f32 %v3115_v46, %v3114_v37  ;;  %v3117_v56 = vpop.f32.mrb[54].mxu0 }
 0x392   : > { %v1991_v48 = vadd.f32 %v3052_v9, %v4728_v6  ;;  %v3055_v57 = vadd.f32 %v3054_v53, %v3053_v34  ;;  %v3118_v58 = vpop.f32.mrb[55].mxu0 }
 0x393   : > { %v3119_v59 = vadd.f32 %v3118_v58, %v3117_v56 }
 0x394   : > { %v1994_v62 = vadd.f32 %v3055_v57, %v4730_v39  ;;  %v4762_v63 = vadd.f32 %v3116_v54, %v1991_v48 }
 0x396   : > { %v3056_v1 = vpop.f32.mrb[36].mxu1  ;;  %v4764_v8 = vadd.f32 %v3119_v59, %v1994_v62 }
 0x397   : > { %v3057_v10 = vpop.f32.mrb[37].mxu1  ;;  %v3120_v22 = vpop.f32.mrb[56].mxu0 }
 0x398   : > { %v3058_v50 = vadd.f32 %v3057_v10, %v3056_v1  ;;  %v3059_v33 = vpop.f32.mrb[38].mxu1  ;;  %v3121_v35 = vpop.f32.mrb[57].mxu0 }
 0x399   : > { %v3060_v36 = vpop.f32.mrb[39].mxu1  ;;  %v3122_v38 = vadd.f32 %v3121_v35, %v3120_v22  ;;  %v3123_v41 = vpop.f32.mrb[58].mxu0 }
 0x39a   : > { %v1999_v6 = vadd.f32 %v3058_v50, %v4732_v28  ;;  %v3061_v49 = vadd.f32 %v3060_v36, %v3059_v33  ;;  %v3124_v4 = vpop.f32.mrb[59].mxu0 }
 0x39b   : > { %v3125_v55 = vadd.f32 %v3124_v4, %v3123_v41 }
 0x39c   : > { %v2002_v39 = vadd.f32 %v3061_v49, %v4734_v47  ;;  %v4768_v2 = vadd.f32 %v3122_v38, %v1999_v6 }
 0x39e   : > { %v3062_v51 = vpop.f32.mrb[40].mxu1  ;;  %v4770_v15 = vadd.f32 %v3125_v55, %v2002_v39 }
 0x39f   : > { %v3063_v43 = vpop.f32.mrb[41].mxu1  ;;  %v3126_v37 = vpop.f32.mrb[60].mxu0 }
 0x3a0   : > { %v3064_v9 = vadd.f32 %v3063_v43, %v3062_v51  ;;  %v3065_v34 = vpop.f32.mrb[42].mxu1  ;;  %v3127_v46 = vpop.f32.mrb[61].mxu0 }
 0x3a1   : > { %v3066_v53 = vpop.f32.mrb[43].mxu1  ;;  %v3128_v54 = vadd.f32 %v3127_v46, %v3126_v37  ;;  %v3129_v56 = vpop.f32.mrb[62].mxu0 }
 0x3a2   : > { %v2007_v28 = vadd.f32 %v3064_v9, %v4736_v44  ;;  %v3067_v48 = vadd.f32 %v3066_v53, %v3065_v34  ;;  %v3130_v57 = vpop.f32.mrb[63].mxu0 }
 0x3a3   : > { %v3131_v58 = vadd.f32 %v3130_v57, %v3129_v56 }
 0x3a4   : > { %v2010_v47 = vadd.f32 %v3067_v48, %v4738_v5  ;;  %v4774_v59 = vadd.f32 %v3128_v54, %v2007_v28 }
 0x3a6   : > { %v3068_v62 = vpop.f32.mrb[44].mxu1  ;;  %v4776_v1 = vadd.f32 %v3131_v58, %v2010_v47 }
 0x3a7   : > { %v3069_v10 = vpop.f32.mrb[45].mxu1  ;;  %v3132_v22 = vpop.f32.mrb[64].mxu0 }
 0x3a8   : > { %v3070_v50 = vadd.f32 %v3069_v10, %v3068_v62  ;;  %v3071_v33 = vpop.f32.mrb[46].mxu1  ;;  %v3133_v35 = vpop.f32.mrb[65].mxu0 }
 0x3a9   : > { %v3072_v36 = vpop.f32.mrb[47].mxu1  ;;  %v3134_v38 = vadd.f32 %v3133_v35, %v3132_v22  ;;  %v3135_v41 = vpop.f32.mrb[66].mxu0 }
 0x3aa   : > { %v2015_v44 = vadd.f32 %v3070_v50, %v4740_v0  ;;  %v3073_v6 = vadd.f32 %v3072_v36, %v3071_v33  ;;  %v3136_v49 = vpop.f32.mrb[67].mxu0 }
 0x3ab   : > { %v3137_v4 = vadd.f32 %v3136_v49, %v3135_v41 }
 0x3ac   : > { %v2018_v5 = vadd.f32 %v3073_v6, %v4742_v7  ;;  %v4780_v55 = vadd.f32 %v3134_v38, %v2015_v44 }
 0x3ae   : > { %v3074_v39 = vpop.f32.mrb[48].mxu1  ;;  %v4782_v51 = vadd.f32 %v3137_v4, %v2018_v5 }
 0x3af   : > { %v3075_v43 = vpop.f32.mrb[49].mxu1  ;;  %v3138_v37 = vpop.f32.mrb[68].mxu0 }
 0x3b0   : > { %v3076_v9 = vadd.f32 %v3075_v43, %v3074_v39  ;;  %v3077_v34 = vpop.f32.mrb[50].mxu1  ;;  %v3139_v46 = vpop.f32.mrb[69].mxu0 }
 0x3b1   : > { %v3078_v53 = vpop.f32.mrb[51].mxu1  ;;  %v3140_v54 = vadd.f32 %v3139_v46, %v3138_v37  ;;  %v3141_v56 = vpop.f32.mrb[70].mxu0 }
 0x3b2   : > { %v2023_v0 = vadd.f32 %v3076_v9, %v4744_v45  ;;  %v3079_v28 = vadd.f32 %v3078_v53, %v3077_v34  ;;  %v3142_v48 = vpop.f32.mrb[71].mxu0 }
 0x3b3   : > { %v3143_v57 = vadd.f32 %v3142_v48, %v3141_v56 }
 0x3b4   : > { %v2026_v7 = vadd.f32 %v3079_v28, %v4746_v3  ;;  %v4786_v58 = vadd.f32 %v3140_v54, %v2023_v0 }
 0x3b6   : > { %v3080_v47 = vpop.f32.mrb[52].mxu1  ;;  %v4788_v62 = vadd.f32 %v3143_v57, %v2026_v7 }
 0x3b7   : > { %v3081_v10 = vpop.f32.mrb[53].mxu1  ;;  %v3144_v22 = vpop.f32.mrb[72].mxu0 }
 0x3b8   : > { %v3082_v50 = vadd.f32 %v3081_v10, %v3080_v47  ;;  %v3083_v33 = vpop.f32.mrb[54].mxu1  ;;  %v3145_v35 = vpop.f32.mrb[73].mxu0 }
 0x3b9   : > { %v3084_v36 = vpop.f32.mrb[55].mxu1  ;;  %v3146_v38 = vadd.f32 %v3145_v35, %v3144_v22  ;;  %v3147_v41 = vpop.f32.mrb[74].mxu0 }
 0x3ba   : > { %v2031_v45 = vadd.f32 %v3082_v50, %v4748_v60  ;;  %v3085_v44 = vadd.f32 %v3084_v36, %v3083_v33  ;;  %v3148_v6 = vpop.f32.mrb[75].mxu0 }
 0x3bb   : > { %v3149_v49 = vadd.f32 %v3148_v6, %v3147_v41 }
 0x3bc   : > { %v2034_v3 = vadd.f32 %v3085_v44, %v4750_v52  ;;  %v4792_v4 = vadd.f32 %v3146_v38, %v2031_v45 }
 0x3be   : > { %v3086_v5 = vpop.f32.mrb[56].mxu1  ;;  %v4794_v39 = vadd.f32 %v3149_v49, %v2034_v3 }
 0x3bf   : > { %v3087_v43 = vpop.f32.mrb[57].mxu1  ;;  %v3150_v37 = vpop.f32.mrb[76].mxu0 }
 0x3c0   : > { %v3088_v9 = vadd.f32 %v3087_v43, %v3086_v5  ;;  %v3089_v34 = vpop.f32.mrb[58].mxu1  ;;  %v3151_v46 = vpop.f32.mrb[77].mxu0 }
 0x3c1   : > { %v3090_v53 = vpop.f32.mrb[59].mxu1  ;;  %v3152_v54 = vadd.f32 %v3151_v46, %v3150_v37  ;;  %v3153_v56 = vpop.f32.mrb[78].mxu0 }
 0x3c2   : > { %v2039_v60 = vadd.f32 %v3088_v9, %v4752_v61  ;;  %v3091_v0 = vadd.f32 %v3090_v53, %v3089_v34  ;;  %v3154_v28 = vpop.f32.mrb[79].mxu0 }
 0x3c3   : > { %v3155_v48 = vadd.f32 %v3154_v28, %v3153_v56 }
 0x3c4   : > { %v2042_v52 = vadd.f32 %v3091_v0, %v4754_v16  ;;  %v4798_v57 = vadd.f32 %v3152_v54, %v2039_v60  ;;  %v1185_v16 = vld [vmem:[%s5153_s28] sm:$0x3] }
 0x3c5   : > { %v4810_v5 = vrot.slane %v1185_v16, %v4489_v40 }
 0x3c6   : > { %v3092_v7 = vpop.f32.mrb[60].mxu1  ;;  %v4800_v47 = vadd.f32 %v3155_v48, %v2042_v52 }
 0x3c7   : > { %v3093_v10 = vpop.f32.mrb[61].mxu1  ;;  %v3156_v22 = vpop.f32.mrb[80].mxu0 }
 0x3c8   : > { %v3094_v50 = vadd.f32 %v3093_v10, %v3092_v7  ;;  %v3095_v33 = vpop.f32.mrb[62].mxu1  ;;  %v3157_v35 = vpop.f32.mrb[81].mxu0 }
 0x3c9   : > { %v3096_v36 = vpop.f32.mrb[63].mxu1  ;;  %v3158_v38 = vadd.f32 %v3157_v35, %v3156_v22  ;;  %v3159_v41 = vpop.f32.mrb[82].mxu0 }
 0x3ca   : > { %v2047_v61 = vadd.f32 %v3094_v50, %v4756_v21  ;;  %v3097_v45 = vadd.f32 %v3096_v36, %v3095_v33  ;;  %v3160_v44 = vpop.f32.mrb[83].mxu0  ;;  %v4816_v21 = vrot.slane %v1185_v16, %v4494_v42 }
 0x3cb   : > { %v3161_v6 = vadd.f32 %v3160_v44, %v3159_v41 }
 0x3cc   : > { %v2050_v49 = vadd.f32 %v3097_v45, %v4758_v27  ;;  %v4807_v3 = vadd.f32 %v3158_v38, %v2047_v61 }
 0x3ce   : > { %v3248_v43 = vpop.f32.mrb[64].mxu1  ;;  %v4812_v37 = vadd.f32 %v3161_v6, %v2050_v49 }
 0x3cf   : > { %v2193_v9 = vadd.f32 %v3248_v43, %v4768_v2  ;;  %v2184_v34 = vpop.f32.mrb[65].mxu1 }
 0x3d0   : > { %v2185_v46 = vadd.f32 %v2184_v34, %v4762_v63  ;;  %v3249_v53 = vpop.f32.mrb[66].mxu1 }
 0x3d1   : > { %v2253_v54 = vmul.f32 %v4810_v5, %v2193_v9  ;;  %v2196_v27 = vadd.f32 %v3249_v53, %v4770_v15  ;;  %v2187_v56 = vpop.f32.mrb[67].mxu1 }
 0x3d2   : > { %v2251_v60 = vmul.f32 %v4810_v5, %v2185_v46  ;;  %v2188_v0 = vadd.f32 %v2187_v56, %v4764_v8 }
 0x3d3   : > { %v2273_v28 = vadd.f32 %v4816_v21, %v2253_v54  ;;  %v2254_v2 = vmul.f32 %v4810_v5, %v2196_v27 }
 0x3d4   : > { %v2271_v48 = vadd.f32 %v4816_v21, %v2251_v60  ;;  %v2252_v52 = vmul.f32 %v4810_v5, %v2188_v0 }
 0x3d5   : > { %v2274_v63 = vadd.f32 %v4816_v21, %v2254_v2  ;;  %v2289_v22 = vmax.f32 %v2273_v28, 0.0 }
 0x3d6   : > { %v2272_v7 = vadd.f32 %v4816_v21, %v2252_v52  ;;  %v3252_v10 = vpop.f32.mrb[68].mxu1  ;;  %v2287_v35 = vmax.f32 %v2271_v48, 0.0 }
 0x3d7   : > { %v2290_v15 = vmax.f32 %v2274_v63, 0.0  ;;  %v2209_v50 = vadd.f32 %v3252_v10, %v4780_v55  ;;  %v2200_v33 = vpop.f32.mrb[69].mxu1 }
 0x3d8   : > { %v2288_v8 = vmax.f32 %v2272_v7, 0.0  ;;  %v2201_v36 = vadd.f32 %v2200_v33, %v4774_v59  ;;  %v3253_v38 = vpop.f32.mrb[70].mxu1 }
 0x3d9   : > { %v2304_v41 = vpack.c.bf16 %v2290_v15, %v2289_v22  ;;  %v2257_v61 = vmul.f32 %v4810_v5, %v2209_v50  ;;  %v2212_v45 = vadd.f32 %v3253_v38, %v4782_v51  ;;  %v2203_v44 = vpop.f32.mrb[71].mxu1 }
 0x3da   : > { %v2255_v16 = vmul.f32 %v4810_v5, %v2201_v36  ;;  %v2204_v6 = vadd.f32 %v2203_v44, %v4776_v1  ;;  %v2303_v49 = vpack.c.bf16 %v2288_v8, %v2287_v35 }
 0x3db   : > { %v2277_v43 = vadd.f32 %v4816_v21, %v2257_v61  ;;  %v2258_v55 = vmul.f32 %v4810_v5, %v2212_v45 }
 0x3dc   : > { %v2275_v9 = vadd.f32 %v4816_v21, %v2255_v16  ;;  %v2256_v59 = vmul.f32 %v4810_v5, %v2204_v6  ;;  %3278 = vmatprep.mubr.bf16.mxu0 %v2303_v49 }
 0x3dd   : > { %v2278_v34 = vadd.f32 %v4816_v21, %v2258_v55  ;;  %3279 = vmatmul.mubr.bf16.vlgmr.msra.gmra.mrb[84].mxu0 %v2304_v41  ;;  %v2293_v53 = vmax.f32 %v2277_v43, 0.0 }
 0x3de   : > { %v2276_v51 = vadd.f32 %v4816_v21, %v2256_v59  ;;  %v3256_v46 = vpop.f32.mrb[72].mxu1  ;;  %v2291_v56 = vmax.f32 %v2275_v9, 0.0 }
 0x3df   : > { %v2294_v54 = vmax.f32 %v2278_v34, 0.0  ;;  %v2225_v1 = vadd.f32 %v3256_v46, %v4792_v4  ;;  %v2216_v27 = vpop.f32.mrb[73].mxu1 }
 0x3e0   : > { %v2292_v60 = vmax.f32 %v2276_v51, 0.0  ;;  %v2217_v0 = vadd.f32 %v2216_v27, %v4786_v58  ;;  %v3257_v28 = vpop.f32.mrb[74].mxu1 }
 0x3e1   : > { %v2306_v2 = vpack.c.bf16 %v2294_v54, %v2293_v53  ;;  %v2261_v48 = vmul.f32 %v4810_v5, %v2225_v1  ;;  %v2228_v52 = vadd.f32 %v3257_v28, %v4794_v39  ;;  %v2219_v63 = vpop.f32.mrb[75].mxu1 }
 0x3e2   : > { %v2259_v7 = vmul.f32 %v4810_v5, %v2217_v0  ;;  %v2220_v10 = vadd.f32 %v2219_v63, %v4788_v62  ;;  %v2305_v22 = vpack.c.bf16 %v2292_v60, %v2291_v56  ;;  %v2311_v60 = vld [vmem:[%s5154_s4] sm:$0x3] }
 0x3e3   : > { %v2281_v15 = vadd.f32 %v4816_v21, %v2261_v48  ;;  %v2262_v4 = vmul.f32 %v4810_v5, %v2228_v52  ;;  %v4872_v0 = vrot.slane %v2311_v60, %v4494_v42 }
 0x3e4   : > { %v2279_v50 = vadd.f32 %v4816_v21, %v2259_v7  ;;  %v2260_v58 = vmul.f32 %v4810_v5, %v2220_v10  ;;  %3282 = vmatprep.mubr.bf16.mxu1 %v2305_v22 }
 0x3e5   : > { %v2282_v33 = vadd.f32 %v4816_v21, %v2262_v4  ;;  %3283 = vmatmul.mubr.bf16.vlgmr.msra.gmra.mrb[80].mxu1 %v2306_v2  ;;  %v2297_v8 = vmax.f32 %v2281_v15, 0.0 }
 0x3e6   : > { %v2280_v39 = vadd.f32 %v4816_v21, %v2260_v58  ;;  %v3260_v35 = vpop.f32.mrb[76].mxu1  ;;  %v2295_v41 = vmax.f32 %v2279_v50, 0.0 }
 0x3e7   : > { %v2298_v36 = vmax.f32 %v2282_v33, 0.0  ;;  %v2241_v62 = vadd.f32 %v3260_v35, %v4807_v3  ;;  %v2232_v38 = vpop.f32.mrb[77].mxu1 }
 0x3e8   : > { %v2296_v61 = vmax.f32 %v2280_v39, 0.0  ;;  %v2233_v45 = vadd.f32 %v2232_v38, %v4798_v57  ;;  %v3261_v44 = vpop.f32.mrb[78].mxu1 }
 0x3e9   : > { %v2265_v16 = vmul.f32 %v4810_v5, %v2241_v62  ;;  %v2244_v6 = vadd.f32 %v3261_v44, %v4812_v37  ;;  %v2235_v49 = vpop.f32.mrb[79].mxu1  ;;  %v2308_v43 = vpack.c.bf16 %v2298_v36, %v2297_v8 }
 0x3ea   : > { %v2263_v55 = vmul.f32 %v4810_v5, %v2233_v45  ;;  %v2236_v9 = vadd.f32 %v2235_v49, %v4800_v47  ;;  %v2307_v59 = vpack.c.bf16 %v2296_v61, %v2295_v41 }
 0x3eb   : > { %v2285_v34 = vadd.f32 %v4816_v21, %v2265_v16  ;;  %v2266_v3 = vmul.f32 %v4810_v5, %v2244_v6 }
 0x3ec   : > { %v2283_v51 = vadd.f32 %v4816_v21, %v2263_v55  ;;  %v2264_v57 = vmul.f32 %v4810_v5, %v2236_v9  ;;  %3286 = vmatprep.mubr.bf16.mxu1 %v2307_v59  ;;  %v4869_v5 = vrot.slane %v2311_v60, %v4489_v40 }
 0x3ed   : > { %v2286_v46 = vadd.f32 %v4816_v21, %v2266_v3  ;;  %3287 = vmatmul.mubr.bf16.gmra.mrb[84].mxu1 %v2308_v43  ;;  %v2301_v53 = vmax.f32 %v2285_v34, 0.0 }
 0x3ee   : > { %v2284_v37 = vadd.f32 %v4816_v21, %v2264_v57  ;;  %v2299_v1 = vmax.f32 %v2283_v51, 0.0 }
 0x3ef   : > { %v2302_v54 = vmax.f32 %v2286_v46, 0.0 }
 0x3f0   : > { %v2300_v27 = vmax.f32 %v2284_v37, 0.0 }
 0x3f1   : > { %v2310_v47 = vpack.c.bf16 %v2302_v54, %v2301_v53 }
 0x3f2   : > { %v2309_v56 = vpack.c.bf16 %v2300_v27, %v2299_v1 }
 0x3f4   : > { %3290 = vmatprep.mubr.bf16.mxu1 %v2309_v56 }
 0x3f5   : > { %3291 = vmatmul.mubr.bf16.gmra.mrb[88].mxu1 %v2310_v47 }
 0x4b0   : > { %v3280_v28 = vpop.f32.mrb[84].mxu0 }
 0x4b1   : > { %v2479_v21 = vmul.f32 %v3280_v28, %v4869_v5  ;;  %v2410_v2 = vpop.f32.mrb[85].mxu0 }
 0x4b2   : > { %v2477_v48 = vmul.f32 %v4869_v5, %v2410_v2  ;;  %v3281_v52 = vpop.f32.mrb[86].mxu0 }
 0x4b3   : > { %v2499_v63 = vadd.f32 %v4872_v0, %v2479_v21  ;;  %v2480_v7 = vmul.f32 %v3281_v52, %v4869_v5  ;;  %v2413_v10 = vpop.f32.mrb[87].mxu0 }
 0x4b4   : > { %v2497_v40 = vadd.f32 %v4872_v0, %v2477_v48  ;;  %v2478_v22 = vmul.f32 %v4869_v5, %v2413_v10 }
 0x4b5   : > { %v2515_v42 = vadd.f32 %v2499_v63, %v4428_v13  ;;  %v2500_v15 = vadd.f32 %v4872_v0, %v2480_v7 }
 0x4b6   : > { %v2513_v4 = vadd.f32 %v2497_v40, %v4422_v11  ;;  %v2498_v50 = vadd.f32 %v4872_v0, %v2478_v22 }
 0x4b7   : > { %v2531_v58 = vmax.f32 %v2515_v42, 0.0  ;;  %v2516_v33 = vadd.f32 %v2500_v15, %v4431_v14 }
 0x4b8   : > { %v2529_v39 = vmax.f32 %v2513_v4, 0.0  ;;  %v2514_v35 = vadd.f32 %v2498_v50, %v4425_v12  ;;  %v3284_v8 = vpop.f32.mrb[80].mxu1 }
 0x4b9   : > { %2547 = vst [vmem:[%s4544_s18 + $0x10] sm:$0xff] %v2531_v58  ;;  %v2532_v36 = vmax.f32 %v2516_v33, 0.0  ;;  %v2483_v62 = vmul.f32 %v3284_v8, %v4869_v5  ;;  %v2426_v13 = vpop.f32.mrb[81].mxu1 }
 0x4ba   : > { %2545 = vst [vmem:[%s4544_s18] sm:$0xff] %v2529_v39  ;;  %v2530_v38 = vmax.f32 %v2514_v35, 0.0  ;;  %v2481_v41 = vmul.f32 %v4869_v5, %v2426_v13  ;;  %v3285_v11 = vpop.f32.mrb[82].mxu1 }
 0x4bb   : > { %2548 = vst [vmem:[%s4544_s18 + $0x18] sm:$0xff] %v2532_v36  ;;  %v2503_v61 = vadd.f32 %v4872_v0, %v2483_v62  ;;  %v2484_v14 = vmul.f32 %v3285_v11, %v4869_v5  ;;  %v2429_v45 = vpop.f32.mrb[83].mxu1 }
 0x4bc   : > { %2546 = vst [vmem:[%s4544_s18 + $0x8] sm:$0xff] %v2530_v38  ;;  %v2501_v12 = vadd.f32 %v4872_v0, %v2481_v41  ;;  %v2482_v44 = vmul.f32 %v4869_v5, %v2429_v45 }
 0x4bd   : > { %v2519_v16 = vadd.f32 %v2503_v61, %v4444_v19  ;;  %v2504_v6 = vadd.f32 %v4872_v0, %v2484_v14 }
 0x4be   : > { %v2517_v49 = vadd.f32 %v2501_v12, %v4438_v17  ;;  %v2502_v43 = vadd.f32 %v4872_v0, %v2482_v44 }
 0x4bf   : > { %v2535_v55 = vmax.f32 %v2519_v16, 0.0  ;;  %v2520_v9 = vadd.f32 %v2504_v6, %v4447_v20 }
 0x4c0   : > { %v2533_v59 = vmax.f32 %v2517_v49, 0.0  ;;  %v2518_v34 = vadd.f32 %v2502_v43, %v4441_v18  ;;  %v3288_v3 = vpop.f32.mrb[84].mxu1 }
 0x4c1   : > { %2551 = vst [vmem:[%s4544_s18 + $0x30] sm:$0xff] %v2535_v55  ;;  %v2536_v51 = vmax.f32 %v2520_v9, 0.0  ;;  %v2487_v57 = vmul.f32 %v3288_v3, %v4869_v5  ;;  %v2442_v19 = vpop.f32.mrb[85].mxu1 }
 0x4c2   : > { %2549 = vst [vmem:[%s4544_s18 + $0x20] sm:$0xff] %v2533_v59  ;;  %v2534_v46 = vmax.f32 %v2518_v34, 0.0  ;;  %v2485_v37 = vmul.f32 %v4869_v5, %v2442_v19  ;;  %v3289_v17 = vpop.f32.mrb[86].mxu1 }
 0x4c3   : > { %2552 = vst [vmem:[%s4544_s18 + $0x38] sm:$0xff] %v2536_v51  ;;  %v2507_v53 = vadd.f32 %v4872_v0, %v2487_v57  ;;  %v2488_v20 = vmul.f32 %v3289_v17, %v4869_v5  ;;  %v2445_v18 = vpop.f32.mrb[87].mxu1 }
 0x4c4   : > { %2550 = vst [vmem:[%s4544_s18 + $0x28] sm:$0xff] %v2534_v46  ;;  %v2505_v54 = vadd.f32 %v4872_v0, %v2485_v37  ;;  %v2486_v1 = vmul.f32 %v4869_v5, %v2445_v18 }
 0x4c5   : > { %v2523_v27 = vadd.f32 %v2507_v53, %v4460_v25  ;;  %v2508_v47 = vadd.f32 %v4872_v0, %v2488_v20 }
 0x4c6   : > { %v2521_v56 = vadd.f32 %v2505_v54, %v4454_v23  ;;  %v2506_v60 = vadd.f32 %v4872_v0, %v2486_v1 }
 0x4c7   : > { %v2539_v28 = vmax.f32 %v2523_v27, 0.0  ;;  %v2524_v21 = vadd.f32 %v2508_v47, %v4463_v26 }
 0x4c8   : > { %v2537_v2 = vmax.f32 %v2521_v56, 0.0  ;;  %v2522_v48 = vadd.f32 %v2506_v60, %v4457_v24  ;;  %v3292_v52 = vpop.f32.mrb[88].mxu1 }
 0x4c9   : > { %2555 = vst [vmem:[%s4544_s18 + $0x50] sm:$0xff] %v2539_v28  ;;  %v2540_v63 = vmax.f32 %v2524_v21, 0.0  ;;  %v2491_v25 = vmul.f32 %v3292_v52, %v4869_v5  ;;  %v2458_v7 = vpop.f32.mrb[89].mxu1 }
 0x4ca   : > { %2553 = vst [vmem:[%s4544_s18 + $0x40] sm:$0xff] %v2537_v2  ;;  %v2538_v23 = vmax.f32 %v2522_v48, 0.0  ;;  %v2489_v10 = vmul.f32 %v4869_v5, %v2458_v7  ;;  %v3293_v40 = vpop.f32.mrb[90].mxu1 }
 0x4cb   : > { %2556 = vst [vmem:[%s4544_s18 + $0x58] sm:$0xff] %v2540_v63  ;;  %v2511_v26 = vadd.f32 %v4872_v0, %v2491_v25  ;;  %v2492_v24 = vmul.f32 %v3293_v40, %v4869_v5  ;;  %v2461_v22 = vpop.f32.mrb[91].mxu1 }
 0x4cc   : > { %2554 = vst [vmem:[%s4544_s18 + $0x48] sm:$0xff] %v2538_v23  ;;  %v2509_v42 = vadd.f32 %v4872_v0, %v2489_v10  ;;  %v2490_v15 = vmul.f32 %v4869_v5, %v2461_v22 }
 0x4cd   : > { %v2527_v4 = vadd.f32 %v2511_v26, %v4476_v31  ;;  %v2512_v50 = vadd.f32 %v4872_v0, %v2492_v24 }
 0x4ce   : > { %v2525_v58 = vadd.f32 %v2509_v42, %v4470_v29  ;;  %v2510_v33 = vadd.f32 %v4872_v0, %v2490_v15 }
 0x4cf   : > { %v2543_v39 = vmax.f32 %v2527_v4, 0.0  ;;  %v2528_v35 = vadd.f32 %v2512_v50, %v4479_v32 }
 0x4d0   : > { %v2541_v8 = vmax.f32 %v2525_v58, 0.0  ;;  %v2526_v5 = vadd.f32 %v2510_v33, %v4473_v30 }
 0x4d1   : > { %2559 = vst [vmem:[%s4544_s18 + $0x70] sm:$0xff] %v2543_v39  ;;  %v2544_v31 = vmax.f32 %v2528_v35, 0.0 }
 0x4d2   : > { %2557 = vst [vmem:[%s4544_s18 + $0x60] sm:$0xff] %v2541_v8  ;;  %v2542_v29 = vmax.f32 %v2526_v5, 0.0 }
 0x4d3   : > { %2560 = vst [vmem:[%s4544_s18 + $0x78] sm:$0xff] %v2544_v31 }
 0x4d4   : > { %2558 = vst [vmem:[%s4544_s18 + $0x68] sm:$0xff] %v2542_v29 }
 0x4d5   : > { %3760 = shalt.err (!%p3757_p13)
}
 0x4d6   : > { %s3761_s18 = scalar_lea.hbm %s4941_s23, 2048  ;;  %s3765_s0 = scalar_lea.hbm %s5157_s7, 8192 }
 0x4d7   : > { %p3762_p11 = scmp.ne.s32.totalorder %s4941_s23, %s3761_s18  ;;  %p3766_p3 = scmp.lt.u32.totalorder %s4941_s23, %s5157_s7 }
 0x4d8   : > { %p3767_p12 = scmp.lt.u32.totalorder %s3765_s0, %s3761_s18  ;;  %p3769_p5 = scmp.lt.u32.totalorder %s3761_s18, %s4941_s23 }
 0x4d9   : > { %p3763_p0 = pnand %p3762_p11, %p5158_p10 }
 0x4da   : > { %p3768_p4 = por %p3767_p12, %p3766_p3 }
 0x4db   : > { %p3764_p1 = pneg %p3763_p0 }
 0x4dc   : > { %p3770_p8 = por %p3769_p5, %p3768_p4 }
 0x4de   : > { %p3771_p2 = pnand %p3770_p8, %p3764_p1 }
 0x4e0   : > { %3774 = shalt.err (!%p3771_p2)
}
 0x4e1   : > { %s3924_s10 = smov 128   ;;  %s3925_s6 = smov 8  }
 0x4e2   : > { %3328 = dma.vmem_to_hbm [thread:$0]  (%p5158_p10), %s4943_s1, 2048, %s4941_s23, %s2562_s27, %s3924_s10, %s3924_s10, %s3925_s6  }
 0x4e3 PF: > { %s5159_s20 = sld [smem:[#allocation36_spill]]  ;;  %p3361_p9 = scmp.ge.s32.totalorder %s3909_s22, 2 }
 0x4e4   : > { %s2593_s21 = sand.u32 1, %s3881_s15  }
 0x4e5   : > { %s2594_s13 = scalar_lea.sflag [#allocation5], %s2593_s21 }
 0x4e9   : > { %p5160_p7 = scmp.ne.s32.totalorder %s5159_s20, 0 }
 0x4eb   : > { %p3351_p6 = pnand %p3361_p9, %p5160_p7 }
 0x4ed   : > { %3852 = dma.done.wait (!%p3351_p6), %s2594_s13, 2048  }
 0x4ee   : > { %3854 = vsyncadd (!%p3351_p6), %s2594_s13, 4294965248  ;;  %s30_s22 = sadd.s32 1, %s3909_s22   ;;  %s5162_s30 = sld [smem:[#allocation22_spill]] }
 0x4ef   : > { %p4977_p13 = scmp.ge.s32.totalorder %s30_s22, 6   ;;  %s5163_s10 = sld [smem:[#allocation23_spill]] }
 0x4f0   : > { %s5164_s26 = sld [smem:[#allocation24_spill]]  ;;  %s5165_s9 = smov %s4138_s12 }
 0x4f1   : > { %s5166_s1 = sld [smem:[#allocation35_spill]]  ;;  %s5167_s18 = sld [smem:[#allocation27_spill]] }
 0x4f2   : > { %s5168_s19 = sld [smem:[#allocation28_spill]]  ;;  %s5169_s20 = sld [smem:[#allocation30_spill]] }
 0x4f3   : > { %s5170_s21 = sld [smem:[#allocation31_spill]]  ;;  %s5172_s13 = smov %s3877_s14 }
 0x4f4   : > { %s5173_s14 = smov %s5165_s9  ;;  %s5174_s15 = smov %s3885_s16 }
 0x4f5   : > { %s5175_s16 = smov %s3889_s17  ;;  %29 = sbr.rel (!%p4977_p13) target bundleno = 25 (0x19), region = 148 }
 0x4f6   : > { %s5171_s12 = smov %s5164_s26 }
 0x4f7   : > { %s5176_s17 = smov %s5166_s1 }
 0x4fc   :  { %2599 = vsyncpa [#allocation4], 1 }
 0x4fd   :  { %2601 = vsyncpa [#allocation4 + $0x1], 1 }
 0x4fe   :  { %2602 = vsyncpa [#allocation7], 1 }
 0x4ff   :  { %2604 = vsyncpa [#allocation7 + $0x1], 1 }
 0x500   :  { %2605 = vsyncpa [#allocation10], 1 }
 0x501   :  { %2606 = vsyncpa [#allocation13], 1 }
 0x502   :  { %2607 = vsyncpa [#allocation5], 1 }
 0x503   :  { %2609 = vsyncpa [#allocation5 + $0x1], 1 }

</bundles_post_ra>
